<compile_context>
chip_gen: v7x
topology: tpu7x:2x2x1
jax: 0.10.0
libtpu: 0.0.40
codegen_flags: <defaults>
</compile_context>

<pallas_src>
import math
import functools

import jax
import jax.numpy as jnp
from jax.experimental import pallas as pl
from jax.experimental.pallas import tpu as pltpu


# ---------------------------------------------------------------------------
# Budget / tiling helpers
# ---------------------------------------------------------------------------

def _divisors(n):
    small, large = [], []
    d = 1
    while d * d <= n:
        if n % d == 0:
            small.append(d)
            if d != n // d:
                large.append(n // d)
        d += 1
    return small + large


def _vmem_budgets():
    """Returns (per-block byte budget for the streaming add, scoped VMEM limit)."""
    cap = 128 << 20
    try:
        info = pltpu.get_tpu_info()
        cap = int(getattr(info, "vmem_capacity_bytes", cap) or cap)
    except Exception:
        pass
    if cap <= (64 << 20):              # v7x-class: 64 MiB physical VMEM
        return 4 << 20, 48 << 20
    return 8 << 20, 64 << 20           # v5e / v6e: 128 MiB physical VMEM


def _pick_bias_tile_i(I, H, J, budget_bytes):
    """Row tile for the (H, tile_i, J) bias block (multiple of 8, or full I)."""
    max_rows = max(1, budget_bytes // (H * J * 4))
    if I <= max_rows:
        return I                        # full extent: always layout-legal
    best = 0
    for d in _divisors(I):
        if d <= max_rows and d % 8 == 0:
            best = max(best, d)
    if best:
        return best
    # No friendly divisor: use a cdiv grid; last partial block is masked.
    return max(8, (max_rows // 8) * 8)


def _pick_add_tiles(B, H, L, budget_bytes):
    """(tile_b, tile_flat) for the lane-dense streaming-add blocks."""
    max_lanes = max(128, budget_bytes // (H * 4))
    if L <= max_lanes:
        tile_flat = L                   # full extent: always layout-legal
    else:
        best = 0
        for d in _divisors(L):
            if d <= max_lanes and d % 128 == 0:
                best = max(best, d)
        # Fallback: cdiv grid, final partial block padded/masked by Pallas.
        tile_flat = best if best else max(128, (max_lanes // 128) * 128)
    # Fold as much of the batch as still fits the block budget.
    per_b = H * tile_flat * 4
    max_b = max(1, budget_bytes // per_b)
    tile_b = 1
    for d in _divisors(B):
        if d <= max_b:
            tile_b = max(tile_b, d)
    return tile_b, tile_flat


# ---------------------------------------------------------------------------
# Kernels
# ---------------------------------------------------------------------------

def _bias_build_kernel(emb_ref, bias_ref, *, tile_i, j_len,
                       num_buckets, max_distance):
    """Build the batch-invariant T5 bias for one row tile.

    emb_ref : (H, NB) f32   -- relative_attention_bias.weight.T * scale
    bias_ref: (H, tile_i, J) f32 output block
    """
    row0 = pl.program_id(0) * tile_i

    i_pos = row0 + jax.lax.broadcasted_iota(jnp.int32, (tile_i, j_len), 0)
    j_pos = jax.lax.broadcasted_iota(jnp.int32, (tile_i, j_len), 1)

    # PyTorch: rel_pos = k_pos - q_pos; n = max(-rel_pos, 0) = max(i - j, 0)
    n = jnp.maximum(i_pos - j_pos, 0)

    max_exact = num_buckets // 2
    is_small = n < max_exact
    # Same expression order as the PyTorch module.  For selected values
    # (n >= max_exact) the log argument is >= 1, so int truncation == floor and
    # the max(n, 1) guard never changes the selected result.
    n_f = jnp.maximum(n, 1).astype(jnp.float32)
    val_if_large = max_exact + (
        jnp.log(n_f / max_exact)
        / math.log(max_distance / max_exact)
        * (num_buckets - max_exact)
    ).astype(jnp.int32)
    val_if_large = jnp.minimum(val_if_large, num_buckets - 1)
    bucket = jnp.where(is_small, n, val_if_large)             # (tile_i, J) i32

    # Exact embedding lookup: select-accumulate over the small static bucket
    # axis (pure VPU, exact in f32, no MXU precision concerns, no reshapes).
    bucket3 = bucket[None, :, :]                               # (1, tile_i, J)
    acc = jnp.zeros((emb_ref.shape[0], tile_i, j_len), jnp.float32)
    for b in range(num_buckets):
        col = emb_ref[:, b:b + 1][:, :, None]                  # (H, 1, 1)
        acc = jnp.where(bucket3 == b, col, acc)
    bias_ref[...] = acc


def _bias_add_kernel(bias_ref, qk_ref, out_ref):
    """Streaming add: out = qk + bias (bias broadcast over the batch tile)."""
    out_ref[...] = (qk_ref[...] + bias_ref[...][None, :, :]).astype(out_ref.dtype)


# ---------------------------------------------------------------------------
# Wrapper
# ---------------------------------------------------------------------------

def t5_relative_position_bias(qk_dots, emb_weight, *, scale,
                              num_buckets=32, max_distance=128,
                              donate_qk=False):
    """qk_dots: (B, H, I, J); emb_weight: (num_buckets, heads)."""
    B, H, I, J = qk_dots.shape
    assert emb_weight.shape == (num_buckets, H)

    block_budget, vmem_limit = _vmem_budgets()

    # Fold the scalar `scale` into the tiny (H, NB) table (glue, plain JAX).
    emb_scaled = jnp.transpose(emb_weight).astype(jnp.float32) * scale

    # -------- Pass 1: one-shot bias build (tiny vs the streaming add) --------
    bias_budget = min(512 << 10, block_budget)
    tile_i = _pick_bias_tile_i(I, H, J, bias_budget)
    num_i_tiles = pl.cdiv(I, tile_i)

    bias = pl.pallas_call(
        functools.partial(_bias_build_kernel, tile_i=tile_i, j_len=J,
                          num_buckets=num_buckets, max_distance=max_distance),
        out_shape=jax.ShapeDtypeStruct((H, I, J), jnp.float32),
        grid=(num_i_tiles,),
        in_specs=[pl.BlockSpec((H, num_buckets), lambda t: (0, 0))],
        out_specs=pl.BlockSpec((H, tile_i, J), lambda t: (0, t, 0)),
        compiler_params=pltpu.CompilerParams(
            dimension_semantics=("parallel",),
            vmem_limit_bytes=vmem_limit),
    )(emb_scaled)

    # -------- Pass 2: lane-dense streaming add, both axes parallel -----------
    L = I * J
    tile_b, tile_flat = _pick_add_tiles(B, H, L, block_budget)
    num_t = pl.cdiv(L, tile_flat)
    num_b = pl.cdiv(B, tile_b)

    bias_flat = bias.reshape(H, L)
    qk_flat = qk_dots.reshape(B, H, L)

    out_flat = pl.pallas_call(
        _bias_add_kernel,
        out_shape=jax.ShapeDtypeStruct((B, H, L), qk_dots.dtype),
        grid=(num_t, num_b),
        in_specs=[
            # Bias block index is independent of b (innermost axis), so the
            # pipeline keeps it resident across the batch steps of a seq tile.
            pl.BlockSpec((H, tile_flat), lambda t, b: (0, t)),
            pl.BlockSpec((tile_b, H, tile_flat), lambda t, b: (b, 0, t)),
        ],
        out_specs=pl.BlockSpec((tile_b, H, tile_flat), lambda t, b: (b, 0, t)),
        compiler_params=pltpu.CompilerParams(
            dimension_semantics=("parallel", "parallel"),
            vmem_limit_bytes=vmem_limit),
        input_output_aliases=({1: 0} if donate_qk else {}),
    )(bias_flat, qk_flat)

    return out_flat.reshape(B, H, I, J)


# ---------------------------------------------------------------------------
# Pure-JAX reference mirroring the PyTorch module
# ---------------------------------------------------------------------------

def _reference(qk_dots, emb_weight, *, scale, num_buckets=32, max_distance=128):
    B, H, I, J = qk_dots.shape
    q_pos = jnp.arange(I, dtype=jnp.int32)
    k_pos = jnp.arange(J, dtype=jnp.int32)
    rel_pos = k_pos[None, :] - q_pos[:, None]
    n = jnp.maximum(-rel_pos, 0)
    max_exact = num_buckets // 2
    is_small = n < max_exact
    n_f = jnp.maximum(n, 1).astype(jnp.float32)
    val_if_large = max_exact + (
        jnp.log(n_f / max_exact) / math.log(max_distance / max_exact)
        * (num_buckets - max_exact)
    ).astype(jnp.int32)
    val_if_large = jnp.minimum(val_if_large, num_buckets - 1)
    bucket = jnp.where(is_small, n, val_if_large)
    values = emb_weight[bucket]                      # (I, J, H)
    bias = jnp.transpose(values, (2, 0, 1))[None]    # (1, H, I, J)
    return qk_dots + bias * scale


if __name__ == "__main__":
    # Small shapes consistent with the module: batch=2, heads=8, seq i=j=16.
    B, HEADS, I, J = 2, 8, 16, 16
    NUM_BUCKETS, MAX_DISTANCE = 32, 128
    DIM_HEAD = 64
    SCALE = DIM_HEAD ** -0.5

    key = jax.random.PRNGKey(0)
    k_qk, k_emb = jax.random.split(key)
    qk_dots = jax.random.normal(k_qk, (B, HEADS, I, J), dtype=jnp.float32)
    # Deterministic "nn.Embedding(num_buckets, heads)" weight.
    emb_weight = jax.random.normal(k_emb, (NUM_BUCKETS, HEADS), dtype=jnp.float32)

    out = t5_relative_position_bias(
        qk_dots, emb_weight,
        scale=SCALE, num_buckets=NUM_BUCKETS, max_distance=MAX_DISTANCE)
    out = jax.block_until_ready(out)

    ref = _reference(
        qk_dots, emb_weight,
        scale=SCALE, num_buckets=NUM_BUCKETS, max_distance=MAX_DISTANCE)
    assert out.shape == qk_dots.shape and out.dtype == qk_dots.dtype
    assert jnp.allclose(out, ref, atol=1e-5, rtol=1e-5)

    print("KERNEL_OK")
</pallas_src>

<mosaic_0001>
module attributes {stable_mosaic.version = 11 : i64} {
  func.func @_bias_build_kernel(%arg0: i32, %arg1: memref<8x32xf32, #tpu.memory_space<vmem>>, %arg2: memref<8x16x16xf32, #tpu.memory_space<vmem>>) attributes {dimension_semantics = [#tpu.dimension_semantics<parallel>], iteration_bounds = array<i64: 1>, scalar_prefetch = 0 : i64, scratch_operands = 0 : i64, tpu.core_type = #tpu.core_type<tc>, window_params = [{pipeline_mode = #tpu.pipeline_mode<synchronous>, transform_indices = @transform_0, window_bounds = array<i64: 8, 32>}, {transform_indices = @transform_1, window_bounds = array<i64: 8, 16, 16>}]} {
    %c16_i32 = arith.constant 16 : i32
    %0 = arith.muli %arg0, %c16_i32 : i32
    %1 = tpu.iota {dimensions = array<i32: 0>} : vector<16x16xi32>
    %2 = vector.broadcast %0 : i32 to vector<16x16xi32>
    %3 = arith.addi %2, %1 : vector<16x16xi32>
    %4 = tpu.iota {dimensions = array<i32: 1>} : vector<16x16xi32>
    %5 = arith.subi %3, %4 : vector<16x16xi32>
    %c0_i32 = arith.constant 0 : i32
    %6 = vector.broadcast %c0_i32 : i32 to vector<16x16xi32>
    %7 = arith.maxsi %5, %6 : vector<16x16xi32>
    %c16_i32_0 = arith.constant 16 : i32
    %8 = vector.broadcast %c16_i32_0 : i32 to vector<16x16xi32>
    %9 = arith.cmpi slt, %7, %8 : vector<16x16xi32>
    %c1_i32 = arith.constant 1 : i32
    %10 = vector.broadcast %c1_i32 : i32 to vector<16x16xi32>
    %11 = arith.maxsi %7, %10 : vector<16x16xi32>
    %12 = arith.sitofp %11 : vector<16x16xi32> to vector<16x16xf32>
    %cst = arith.constant 1.600000e+01 : f32
    %13 = vector.broadcast %cst : f32 to vector<16x16xf32>
    %14 = arith.divf %12, %13 : vector<16x16xf32>
    %15 = math.log %14 : vector<16x16xf32>
    %cst_1 = arith.constant 2.07944155 : f32
    %16 = vector.broadcast %cst_1 : f32 to vector<16x16xf32>
    %17 = arith.divf %15, %16 : vector<16x16xf32>
    %cst_2 = arith.constant 1.600000e+01 : f32
    %18 = vector.broadcast %cst_2 : f32 to vector<16x16xf32>
    %19 = arith.mulf %17, %18 : vector<16x16xf32>
    %20 = arith.fptosi %19 : vector<16x16xf32> to vector<16x16xi32>
    %c16_i32_3 = arith.constant 16 : i32
    %21 = vector.broadcast %c16_i32_3 : i32 to vector<16x16xi32>
    %22 = arith.addi %21, %20 : vector<16x16xi32>
    %c31_i32 = arith.constant 31 : i32
    %23 = vector.broadcast %c31_i32 : i32 to vector<16x16xi32>
    %24 = arith.minsi %22, %23 : vector<16x16xi32>
    %25 = arith.select %9, %7, %24 : vector<16x16xi1>, vector<16x16xi32>
    %26 = vector.shape_cast %25 : vector<16x16xi32> to vector<1x16x16xi32>
    %cst_4 = arith.constant 0.000000e+00 : f32
    %27 = vector.broadcast %cst_4 : f32 to vector<8x16x16xf32>
    %c0 = arith.constant 0 : index
    %c0_5 = arith.constant 0 : index
    %28 = vector.load %arg1[%c0, %c0_5] : memref<8x32xf32, #tpu.memory_space<vmem>>, vector<8x1xf32>
    %29 = vector.shape_cast %28 : vector<8x1xf32> to vector<8x1x1xf32>
    %c0_i32_6 = arith.constant 0 : i32
    %30 = vector.broadcast %c0_i32_6 : i32 to vector<1x16x16xi32>
    %31 = arith.cmpi eq, %26, %30 : vector<1x16x16xi32>
    %32 = vector.shape_cast %31 : vector<1x16x16xi1> to vector<1x16x16xi1>
    %33 = vector.broadcast %32 : vector<1x16x16xi1> to vector<8x16x16xi1>
    %34 = vector.shape_cast %29 : vector<8x1x1xf32> to vector<8x1x1xf32>
    %35 = vector.broadcast %34 : vector<8x1x1xf32> to vector<8x16x16xf32>
    %36 = arith.select %33, %35, %27 : vector<8x16x16xi1>, vector<8x16x16xf32>
    %c0_7 = arith.constant 0 : index
    %c1 = arith.constant 1 : index
    %37 = vector.load %arg1[%c0_7, %c1] : memref<8x32xf32, #tpu.memory_space<vmem>>, vector<8x1xf32>
    %38 = vector.shape_cast %37 : vector<8x1xf32> to vector<8x1x1xf32>
    %c1_i32_8 = arith.constant 1 : i32
    %39 = vector.broadcast %c1_i32_8 : i32 to vector<1x16x16xi32>
    %40 = arith.cmpi eq, %26, %39 : vector<1x16x16xi32>
    %41 = vector.shape_cast %40 : vector<1x16x16xi1> to vector<1x16x16xi1>
    %42 = vector.broadcast %41 : vector<1x16x16xi1> to vector<8x16x16xi1>
    %43 = vector.shape_cast %38 : vector<8x1x1xf32> to vector<8x1x1xf32>
    %44 = vector.broadcast %43 : vector<8x1x1xf32> to vector<8x16x16xf32>
    %45 = arith.select %42, %44, %36 : vector<8x16x16xi1>, vector<8x16x16xf32>
    %c0_9 = arith.constant 0 : index
    %c2 = arith.constant 2 : index
    %46 = vector.load %arg1[%c0_9, %c2] : memref<8x32xf32, #tpu.memory_space<vmem>>, vector<8x1xf32>
    %47 = vector.shape_cast %46 : vector<8x1xf32> to vector<8x1x1xf32>
    %c2_i32 = arith.constant 2 : i32
    %48 = vector.broadcast %c2_i32 : i32 to vector<1x16x16xi32>
    %49 = arith.cmpi eq, %26, %48 : vector<1x16x16xi32>
    %50 = vector.shape_cast %49 : vector<1x16x16xi1> to vector<1x16x16xi1>
    %51 = vector.broadcast %50 : vector<1x16x16xi1> to vector<8x16x16xi1>
    %52 = vector.shape_cast %47 : vector<8x1x1xf32> to vector<8x1x1xf32>
    %53 = vector.broadcast %52 : vector<8x1x1xf32> to vector<8x16x16xf32>
    %54 = arith.select %51, %53, %45 : vector<8x16x16xi1>, vector<8x16x16xf32>
    %c0_10 = arith.constant 0 : index
    %c3 = arith.constant 3 : index
    %55 = vector.load %arg1[%c0_10, %c3] : memref<8x32xf32, #tpu.memory_space<vmem>>, vector<8x1xf32>
    %56 = vector.shape_cast %55 : vector<8x1xf32> to vector<8x1x1xf32>
    %c3_i32 = arith.constant 3 : i32
    %57 = vector.broadcast %c3_i32 : i32 to vector<1x16x16xi32>
    %58 = arith.cmpi eq, %26, %57 : vector<1x16x16xi32>
    %59 = vector.shape_cast %58 : vector<1x16x16xi1> to vector<1x16x16xi1>
    %60 = vector.broadcast %59 : vector<1x16x16xi1> to vector<8x16x16xi1>
    %61 = vector.shape_cast %56 : vector<8x1x1xf32> to vector<8x1x1xf32>
    %62 = vector.broadcast %61 : vector<8x1x1xf32> to vector<8x16x16xf32>
    %63 = arith.select %60, %62, %54 : vector<8x16x16xi1>, vector<8x16x16xf32>
    %c0_11 = arith.constant 0 : index
    %c4 = arith.constant 4 : index
    %64 = vector.load %arg1[%c0_11, %c4] : memref<8x32xf32, #tpu.memory_space<vmem>>, vector<8x1xf32>
    %65 = vector.shape_cast %64 : vector<8x1xf32> to vector<8x1x1xf32>
    %c4_i32 = arith.constant 4 : i32
    %66 = vector.broadcast %c4_i32 : i32 to vector<1x16x16xi32>
    %67 = arith.cmpi eq, %26, %66 : vector<1x16x16xi32>
    %68 = vector.shape_cast %67 : vector<1x16x16xi1> to vector<1x16x16xi1>
    %69 = vector.broadcast %68 : vector<1x16x16xi1> to vector<8x16x16xi1>
    %70 = vector.shape_cast %65 : vector<8x1x1xf32> to vector<8x1x1xf32>
    %71 = vector.broadcast %70 : vector<8x1x1xf32> to vector<8x16x16xf32>
    %72 = arith.select %69, %71, %63 : vector<8x16x16xi1>, vector<8x16x16xf32>
    %c0_12 = arith.constant 0 : index
    %c5 = arith.constant 5 : index
    %73 = vector.load %arg1[%c0_12, %c5] : memref<8x32xf32, #tpu.memory_space<vmem>>, vector<8x1xf32>
    %74 = vector.shape_cast %73 : vector<8x1xf32> to vector<8x1x1xf32>
    %c5_i32 = arith.constant 5 : i32
    %75 = vector.broadcast %c5_i32 : i32 to vector<1x16x16xi32>
    %76 = arith.cmpi eq, %26, %75 : vector<1x16x16xi32>
    %77 = vector.shape_cast %76 : vector<1x16x16xi1> to vector<1x16x16xi1>
    %78 = vector.broadcast %77 : vector<1x16x16xi1> to vector<8x16x16xi1>
    %79 = vector.shape_cast %74 : vector<8x1x1xf32> to vector<8x1x1xf32>
    %80 = vector.broadcast %79 : vector<8x1x1xf32> to vector<8x16x16xf32>
    %81 = arith.select %78, %80, %72 : vector<8x16x16xi1>, vector<8x16x16xf32>
    %c0_13 = arith.constant 0 : index
    %c6 = arith.constant 6 : index
    %82 = vector.load %arg1[%c0_13, %c6] : memref<8x32xf32, #tpu.memory_space<vmem>>, vector<8x1xf32>
    %83 = vector.shape_cast %82 : vector<8x1xf32> to vector<8x1x1xf32>
    %c6_i32 = arith.constant 6 : i32
    %84 = vector.broadcast %c6_i32 : i32 to vector<1x16x16xi32>
    %85 = arith.cmpi eq, %26, %84 : vector<1x16x16xi32>
    %86 = vector.shape_cast %85 : vector<1x16x16xi1> to vector<1x16x16xi1>
    %87 = vector.broadcast %86 : vector<1x16x16xi1> to vector<8x16x16xi1>
    %88 = vector.shape_cast %83 : vector<8x1x1xf32> to vector<8x1x1xf32>
    %89 = vector.broadcast %88 : vector<8x1x1xf32> to vector<8x16x16xf32>
    %90 = arith.select %87, %89, %81 : vector<8x16x16xi1>, vector<8x16x16xf32>
    %c0_14 = arith.constant 0 : index
    %c7 = arith.constant 7 : index
    %91 = vector.load %arg1[%c0_14, %c7] : memref<8x32xf32, #tpu.memory_space<vmem>>, vector<8x1xf32>
    %92 = vector.shape_cast %91 : vector<8x1xf32> to vector<8x1x1xf32>
    %c7_i32 = arith.constant 7 : i32
    %93 = vector.broadcast %c7_i32 : i32 to vector<1x16x16xi32>
    %94 = arith.cmpi eq, %26, %93 : vector<1x16x16xi32>
    %95 = vector.shape_cast %94 : vector<1x16x16xi1> to vector<1x16x16xi1>
    %96 = vector.broadcast %95 : vector<1x16x16xi1> to vector<8x16x16xi1>
    %97 = vector.shape_cast %92 : vector<8x1x1xf32> to vector<8x1x1xf32>
    %98 = vector.broadcast %97 : vector<8x1x1xf32> to vector<8x16x16xf32>
    %99 = arith.select %96, %98, %90 : vector<8x16x16xi1>, vector<8x16x16xf32>
    %c0_15 = arith.constant 0 : index
    %c8 = arith.constant 8 : index
    %100 = vector.load %arg1[%c0_15, %c8] : memref<8x32xf32, #tpu.memory_space<vmem>>, vector<8x1xf32>
    %101 = vector.shape_cast %100 : vector<8x1xf32> to vector<8x1x1xf32>
    %c8_i32 = arith.constant 8 : i32
    %102 = vector.broadcast %c8_i32 : i32 to vector<1x16x16xi32>
    %103 = arith.cmpi eq, %26, %102 : vector<1x16x16xi32>
    %104 = vector.shape_cast %103 : vector<1x16x16xi1> to vector<1x16x16xi1>
    %105 = vector.broadcast %104 : vector<1x16x16xi1> to vector<8x16x16xi1>
    %106 = vector.shape_cast %101 : vector<8x1x1xf32> to vector<8x1x1xf32>
    %107 = vector.broadcast %106 : vector<8x1x1xf32> to vector<8x16x16xf32>
    %108 = arith.select %105, %107, %99 : vector<8x16x16xi1>, vector<8x16x16xf32>
    %c0_16 = arith.constant 0 : index
    %c9 = arith.constant 9 : index
    %109 = vector.load %arg1[%c0_16, %c9] : memref<8x32xf32, #tpu.memory_space<vmem>>, vector<8x1xf32>
    %110 = vector.shape_cast %109 : vector<8x1xf32> to vector<8x1x1xf32>
    %c9_i32 = arith.constant 9 : i32
    %111 = vector.broadcast %c9_i32 : i32 to vector<1x16x16xi32>
    %112 = arith.cmpi eq, %26, %111 : vector<1x16x16xi32>
    %113 = vector.shape_cast %112 : vector<1x16x16xi1> to vector<1x16x16xi1>
    %114 = vector.broadcast %113 : vector<1x16x16xi1> to vector<8x16x16xi1>
    %115 = vector.shape_cast %110 : vector<8x1x1xf32> to vector<8x1x1xf32>
    %116 = vector.broadcast %115 : vector<8x1x1xf32> to vector<8x16x16xf32>
    %117 = arith.select %114, %116, %108 : vector<8x16x16xi1>, vector<8x16x16xf32>
    %c0_17 = arith.constant 0 : index
    %c10 = arith.constant 10 : index
    %118 = vector.load %arg1[%c0_17, %c10] : memref<8x32xf32, #tpu.memory_space<vmem>>, vector<8x1xf32>
    %119 = vector.shape_cast %118 : vector<8x1xf32> to vector<8x1x1xf32>
    %c10_i32 = arith.constant 10 : i32
    %120 = vector.broadcast %c10_i32 : i32 to vector<1x16x16xi32>
    %121 = arith.cmpi eq, %26, %120 : vector<1x16x16xi32>
    %122 = vector.shape_cast %121 : vector<1x16x16xi1> to vector<1x16x16xi1>
    %123 = vector.broadcast %122 : vector<1x16x16xi1> to vector<8x16x16xi1>
    %124 = vector.shape_cast %119 : vector<8x1x1xf32> to vector<8x1x1xf32>
    %125 = vector.broadcast %124 : vector<8x1x1xf32> to vector<8x16x16xf32>
    %126 = arith.select %123, %125, %117 : vector<8x16x16xi1>, vector<8x16x16xf32>
    %c0_18 = arith.constant 0 : index
    %c11 = arith.constant 11 : index
    %127 = vector.load %arg1[%c0_18, %c11] : memref<8x32xf32, #tpu.memory_space<vmem>>, vector<8x1xf32>
    %128 = vector.shape_cast %127 : vector<8x1xf32> to vector<8x1x1xf32>
    %c11_i32 = arith.constant 11 : i32
    %129 = vector.broadcast %c11_i32 : i32 to vector<1x16x16xi32>
    %130 = arith.cmpi eq, %26, %129 : vector<1x16x16xi32>
    %131 = vector.shape_cast %130 : vector<1x16x16xi1> to vector<1x16x16xi1>
    %132 = vector.broadcast %131 : vector<1x16x16xi1> to vector<8x16x16xi1>
    %133 = vector.shape_cast %128 : vector<8x1x1xf32> to vector<8x1x1xf32>
    %134 = vector.broadcast %133 : vector<8x1x1xf32> to vector<8x16x16xf32>
    %135 = arith.select %132, %134, %126 : vector<8x16x16xi1>, vector<8x16x16xf32>
    %c0_19 = arith.constant 0 : index
    %c12 = arith.constant 12 : index
    %136 = vector.load %arg1[%c0_19, %c12] : memref<8x32xf32, #tpu.memory_space<vmem>>, vector<8x1xf32>
    %137 = vector.shape_cast %136 : vector<8x1xf32> to vector<8x1x1xf32>
    %c12_i32 = arith.constant 12 : i32
    %138 = vector.broadcast %c12_i32 : i32 to vector<1x16x16xi32>
    %139 = arith.cmpi eq, %26, %138 : vector<1x16x16xi32>
    %140 = vector.shape_cast %139 : vector<1x16x16xi1> to vector<1x16x16xi1>
    %141 = vector.broadcast %140 : vector<1x16x16xi1> to vector<8x16x16xi1>
    %142 = vector.shape_cast %137 : vector<8x1x1xf32> to vector<8x1x1xf32>
    %143 = vector.broadcast %142 : vector<8x1x1xf32> to vector<8x16x16xf32>
    %144 = arith.select %141, %143, %135 : vector<8x16x16xi1>, vector<8x16x16xf32>
    %c0_20 = arith.constant 0 : index
    %c13 = arith.constant 13 : index
    %145 = vector.load %arg1[%c0_20, %c13] : memref<8x32xf32, #tpu.memory_space<vmem>>, vector<8x1xf32>
    %146 = vector.shape_cast %145 : vector<8x1xf32> to vector<8x1x1xf32>
    %c13_i32 = arith.constant 13 : i32
    %147 = vector.broadcast %c13_i32 : i32 to vector<1x16x16xi32>
    %148 = arith.cmpi eq, %26, %147 : vector<1x16x16xi32>
    %149 = vector.shape_cast %148 : vector<1x16x16xi1> to vector<1x16x16xi1>
    %150 = vector.broadcast %149 : vector<1x16x16xi1> to vector<8x16x16xi1>
    %151 = vector.shape_cast %146 : vector<8x1x1xf32> to vector<8x1x1xf32>
    %152 = vector.broadcast %151 : vector<8x1x1xf32> to vector<8x16x16xf32>
    %153 = arith.select %150, %152, %144 : vector<8x16x16xi1>, vector<8x16x16xf32>
    %c0_21 = arith.constant 0 : index
    %c14 = arith.constant 14 : index
    %154 = vector.load %arg1[%c0_21, %c14] : memref<8x32xf32, #tpu.memory_space<vmem>>, vector<8x1xf32>
    %155 = vector.shape_cast %154 : vector<8x1xf32> to vector<8x1x1xf32>
    %c14_i32 = arith.constant 14 : i32
    %156 = vector.broadcast %c14_i32 : i32 to vector<1x16x16xi32>
    %157 = arith.cmpi eq, %26, %156 : vector<1x16x16xi32>
    %158 = vector.shape_cast %157 : vector<1x16x16xi1> to vector<1x16x16xi1>
    %159 = vector.broadcast %158 : vector<1x16x16xi1> to vector<8x16x16xi1>
    %160 = vector.shape_cast %155 : vector<8x1x1xf32> to vector<8x1x1xf32>
    %161 = vector.broadcast %160 : vector<8x1x1xf32> to vector<8x16x16xf32>
    %162 = arith.select %159, %161, %153 : vector<8x16x16xi1>, vector<8x16x16xf32>
    %c0_22 = arith.constant 0 : index
    %c15 = arith.constant 15 : index
    %163 = vector.load %arg1[%c0_22, %c15] : memref<8x32xf32, #tpu.memory_space<vmem>>, vector<8x1xf32>
    %164 = vector.shape_cast %163 : vector<8x1xf32> to vector<8x1x1xf32>
    %c15_i32 = arith.constant 15 : i32
    %165 = vector.broadcast %c15_i32 : i32 to vector<1x16x16xi32>
    %166 = arith.cmpi eq, %26, %165 : vector<1x16x16xi32>
    %167 = vector.shape_cast %166 : vector<1x16x16xi1> to vector<1x16x16xi1>
    %168 = vector.broadcast %167 : vector<1x16x16xi1> to vector<8x16x16xi1>
    %169 = vector.shape_cast %164 : vector<8x1x1xf32> to vector<8x1x1xf32>
    %170 = vector.broadcast %169 : vector<8x1x1xf32> to vector<8x16x16xf32>
    %171 = arith.select %168, %170, %162 : vector<8x16x16xi1>, vector<8x16x16xf32>
    %c0_23 = arith.constant 0 : index
    %c16 = arith.constant 16 : index
    %172 = vector.load %arg1[%c0_23, %c16] : memref<8x32xf32, #tpu.memory_space<vmem>>, vector<8x1xf32>
    %173 = vector.shape_cast %172 : vector<8x1xf32> to vector<8x1x1xf32>
    %c16_i32_24 = arith.constant 16 : i32
    %174 = vector.broadcast %c16_i32_24 : i32 to vector<1x16x16xi32>
    %175 = arith.cmpi eq, %26, %174 : vector<1x16x16xi32>
    %176 = vector.shape_cast %175 : vector<1x16x16xi1> to vector<1x16x16xi1>
    %177 = vector.broadcast %176 : vector<1x16x16xi1> to vector<8x16x16xi1>
    %178 = vector.shape_cast %173 : vector<8x1x1xf32> to vector<8x1x1xf32>
    %179 = vector.broadcast %178 : vector<8x1x1xf32> to vector<8x16x16xf32>
    %180 = arith.select %177, %179, %171 : vector<8x16x16xi1>, vector<8x16x16xf32>
    %c0_25 = arith.constant 0 : index
    %c17 = arith.constant 17 : index
    %181 = vector.load %arg1[%c0_25, %c17] : memref<8x32xf32, #tpu.memory_space<vmem>>, vector<8x1xf32>
    %182 = vector.shape_cast %181 : vector<8x1xf32> to vector<8x1x1xf32>
    %c17_i32 = arith.constant 17 : i32
    %183 = vector.broadcast %c17_i32 : i32 to vector<1x16x16xi32>
    %184 = arith.cmpi eq, %26, %183 : vector<1x16x16xi32>
    %185 = vector.shape_cast %184 : vector<1x16x16xi1> to vector<1x16x16xi1>
    %186 = vector.broadcast %185 : vector<1x16x16xi1> to vector<8x16x16xi1>
    %187 = vector.shape_cast %182 : vector<8x1x1xf32> to vector<8x1x1xf32>
    %188 = vector.broadcast %187 : vector<8x1x1xf32> to vector<8x16x16xf32>
    %189 = arith.select %186, %188, %180 : vector<8x16x16xi1>, vector<8x16x16xf32>
    %c0_26 = arith.constant 0 : index
    %c18 = arith.constant 18 : index
    %190 = vector.load %arg1[%c0_26, %c18] : memref<8x32xf32, #tpu.memory_space<vmem>>, vector<8x1xf32>
    %191 = vector.shape_cast %190 : vector<8x1xf32> to vector<8x1x1xf32>
    %c18_i32 = arith.constant 18 : i32
    %192 = vector.broadcast %c18_i32 : i32 to vector<1x16x16xi32>
    %193 = arith.cmpi eq, %26, %192 : vector<1x16x16xi32>
    %194 = vector.shape_cast %193 : vector<1x16x16xi1> to vector<1x16x16xi1>
    %195 = vector.broadcast %194 : vector<1x16x16xi1> to vector<8x16x16xi1>
    %196 = vector.shape_cast %191 : vector<8x1x1xf32> to vector<8x1x1xf32>
    %197 = vector.broadcast %196 : vector<8x1x1xf32> to vector<8x16x16xf32>
    %198 = arith.select %195, %197, %189 : vector<8x16x16xi1>, vector<8x16x16xf32>
    %c0_27 = arith.constant 0 : index
    %c19 = arith.constant 19 : index
    %199 = vector.load %arg1[%c0_27, %c19] : memref<8x32xf32, #tpu.memory_space<vmem>>, vector<8x1xf32>
    %200 = vector.shape_cast %199 : vector<8x1xf32> to vector<8x1x1xf32>
    %c19_i32 = arith.constant 19 : i32
    %201 = vector.broadcast %c19_i32 : i32 to vector<1x16x16xi32>
    %202 = arith.cmpi eq, %26, %201 : vector<1x16x16xi32>
    %203 = vector.shape_cast %202 : vector<1x16x16xi1> to vector<1x16x16xi1>
    %204 = vector.broadcast %203 : vector<1x16x16xi1> to vector<8x16x16xi1>
    %205 = vector.shape_cast %200 : vector<8x1x1xf32> to vector<8x1x1xf32>
    %206 = vector.broadcast %205 : vector<8x1x1xf32> to vector<8x16x16xf32>
    %207 = arith.select %204, %206, %198 : vector<8x16x16xi1>, vector<8x16x16xf32>
    %c0_28 = arith.constant 0 : index
    %c20 = arith.constant 20 : index
    %208 = vector.load %arg1[%c0_28, %c20] : memref<8x32xf32, #tpu.memory_space<vmem>>, vector<8x1xf32>
    %209 = vector.shape_cast %208 : vector<8x1xf32> to vector<8x1x1xf32>
    %c20_i32 = arith.constant 20 : i32
    %210 = vector.broadcast %c20_i32 : i32 to vector<1x16x16xi32>
    %211 = arith.cmpi eq, %26, %210 : vector<1x16x16xi32>
    %212 = vector.shape_cast %211 : vector<1x16x16xi1> to vector<1x16x16xi1>
    %213 = vector.broadcast %212 : vector<1x16x16xi1> to vector<8x16x16xi1>
    %214 = vector.shape_cast %209 : vector<8x1x1xf32> to vector<8x1x1xf32>
    %215 = vector.broadcast %214 : vector<8x1x1xf32> to vector<8x16x16xf32>
    %216 = arith.select %213, %215, %207 : vector<8x16x16xi1>, vector<8x16x16xf32>
    %c0_29 = arith.constant 0 : index
    %c21 = arith.constant 21 : index
    %217 = vector.load %arg1[%c0_29, %c21] : memref<8x32xf32, #tpu.memory_space<vmem>>, vector<8x1xf32>
    %218 = vector.shape_cast %217 : vector<8x1xf32> to vector<8x1x1xf32>
    %c21_i32 = arith.constant 21 : i32
    %219 = vector.broadcast %c21_i32 : i32 to vector<1x16x16xi32>
    %220 = arith.cmpi eq, %26, %219 : vector<1x16x16xi32>
    %221 = vector.shape_cast %220 : vector<1x16x16xi1> to vector<1x16x16xi1>
    %222 = vector.broadcast %221 : vector<1x16x16xi1> to vector<8x16x16xi1>
    %223 = vector.shape_cast %218 : vector<8x1x1xf32> to vector<8x1x1xf32>
    %224 = vector.broadcast %223 : vector<8x1x1xf32> to vector<8x16x16xf32>
    %225 = arith.select %222, %224, %216 : vector<8x16x16xi1>, vector<8x16x16xf32>
    %c0_30 = arith.constant 0 : index
    %c22 = arith.constant 22 : index
    %226 = vector.load %arg1[%c0_30, %c22] : memref<8x32xf32, #tpu.memory_space<vmem>>, vector<8x1xf32>
    %227 = vector.shape_cast %226 : vector<8x1xf32> to vector<8x1x1xf32>
    %c22_i32 = arith.constant 22 : i32
    %228 = vector.broadcast %c22_i32 : i32 to vector<1x16x16xi32>
    %229 = arith.cmpi eq, %26, %228 : vector<1x16x16xi32>
    %230 = vector.shape_cast %229 : vector<1x16x16xi1> to vector<1x16x16xi1>
    %231 = vector.broadcast %230 : vector<1x16x16xi1> to vector<8x16x16xi1>
    %232 = vector.shape_cast %227 : vector<8x1x1xf32> to vector<8x1x1xf32>
    %233 = vector.broadcast %232 : vector<8x1x1xf32> to vector<8x16x16xf32>
    %234 = arith.select %231, %233, %225 : vector<8x16x16xi1>, vector<8x16x16xf32>
    %c0_31 = arith.constant 0 : index
    %c23 = arith.constant 23 : index
    %235 = vector.load %arg1[%c0_31, %c23] : memref<8x32xf32, #tpu.memory_space<vmem>>, vector<8x1xf32>
    %236 = vector.shape_cast %235 : vector<8x1xf32> to vector<8x1x1xf32>
    %c23_i32 = arith.constant 23 : i32
    %237 = vector.broadcast %c23_i32 : i32 to vector<1x16x16xi32>
    %238 = arith.cmpi eq, %26, %237 : vector<1x16x16xi32>
    %239 = vector.shape_cast %238 : vector<1x16x16xi1> to vector<1x16x16xi1>
    %240 = vector.broadcast %239 : vector<1x16x16xi1> to vector<8x16x16xi1>
    %241 = vector.shape_cast %236 : vector<8x1x1xf32> to vector<8x1x1xf32>
    %242 = vector.broadcast %241 : vector<8x1x1xf32> to vector<8x16x16xf32>
    %243 = arith.select %240, %242, %234 : vector<8x16x16xi1>, vector<8x16x16xf32>
    %c0_32 = arith.constant 0 : index
    %c24 = arith.constant 24 : index
    %244 = vector.load %arg1[%c0_32, %c24] : memref<8x32xf32, #tpu.memory_space<vmem>>, vector<8x1xf32>
    %245 = vector.shape_cast %244 : vector<8x1xf32> to vector<8x1x1xf32>
    %c24_i32 = arith.constant 24 : i32
    %246 = vector.broadcast %c24_i32 : i32 to vector<1x16x16xi32>
    %247 = arith.cmpi eq, %26, %246 : vector<1x16x16xi32>
    %248 = vector.shape_cast %247 : vector<1x16x16xi1> to vector<1x16x16xi1>
    %249 = vector.broadcast %248 : vector<1x16x16xi1> to vector<8x16x16xi1>
    %250 = vector.shape_cast %245 : vector<8x1x1xf32> to vector<8x1x1xf32>
    %251 = vector.broadcast %250 : vector<8x1x1xf32> to vector<8x16x16xf32>
    %252 = arith.select %249, %251, %243 : vector<8x16x16xi1>, vector<8x16x16xf32>
    %c0_33 = arith.constant 0 : index
    %c25 = arith.constant 25 : index
    %253 = vector.load %arg1[%c0_33, %c25] : memref<8x32xf32, #tpu.memory_space<vmem>>, vector<8x1xf32>
    %254 = vector.shape_cast %253 : vector<8x1xf32> to vector<8x1x1xf32>
    %c25_i32 = arith.constant 25 : i32
    %255 = vector.broadcast %c25_i32 : i32 to vector<1x16x16xi32>
    %256 = arith.cmpi eq, %26, %255 : vector<1x16x16xi32>
    %257 = vector.shape_cast %256 : vector<1x16x16xi1> to vector<1x16x16xi1>
    %258 = vector.broadcast %257 : vector<1x16x16xi1> to vector<8x16x16xi1>
    %259 = vector.shape_cast %254 : vector<8x1x1xf32> to vector<8x1x1xf32>
    %260 = vector.broadcast %259 : vector<8x1x1xf32> to vector<8x16x16xf32>
    %261 = arith.select %258, %260, %252 : vector<8x16x16xi1>, vector<8x16x16xf32>
    %c0_34 = arith.constant 0 : index
    %c26 = arith.constant 26 : index
    %262 = vector.load %arg1[%c0_34, %c26] : memref<8x32xf32, #tpu.memory_space<vmem>>, vector<8x1xf32>
    %263 = vector.shape_cast %262 : vector<8x1xf32> to vector<8x1x1xf32>
    %c26_i32 = arith.constant 26 : i32
    %264 = vector.broadcast %c26_i32 : i32 to vector<1x16x16xi32>
    %265 = arith.cmpi eq, %26, %264 : vector<1x16x16xi32>
    %266 = vector.shape_cast %265 : vector<1x16x16xi1> to vector<1x16x16xi1>
    %267 = vector.broadcast %266 : vector<1x16x16xi1> to vector<8x16x16xi1>
    %268 = vector.shape_cast %263 : vector<8x1x1xf32> to vector<8x1x1xf32>
    %269 = vector.broadcast %268 : vector<8x1x1xf32> to vector<8x16x16xf32>
    %270 = arith.select %267, %269, %261 : vector<8x16x16xi1>, vector<8x16x16xf32>
    %c0_35 = arith.constant 0 : index
    %c27 = arith.constant 27 : index
    %271 = vector.load %arg1[%c0_35, %c27] : memref<8x32xf32, #tpu.memory_space<vmem>>, vector<8x1xf32>
    %272 = vector.shape_cast %271 : vector<8x1xf32> to vector<8x1x1xf32>
    %c27_i32 = arith.constant 27 : i32
    %273 = vector.broadcast %c27_i32 : i32 to vector<1x16x16xi32>
    %274 = arith.cmpi eq, %26, %273 : vector<1x16x16xi32>
    %275 = vector.shape_cast %274 : vector<1x16x16xi1> to vector<1x16x16xi1>
    %276 = vector.broadcast %275 : vector<1x16x16xi1> to vector<8x16x16xi1>
    %277 = vector.shape_cast %272 : vector<8x1x1xf32> to vector<8x1x1xf32>
    %278 = vector.broadcast %277 : vector<8x1x1xf32> to vector<8x16x16xf32>
    %279 = arith.select %276, %278, %270 : vector<8x16x16xi1>, vector<8x16x16xf32>
    %c0_36 = arith.constant 0 : index
    %c28 = arith.constant 28 : index
    %280 = vector.load %arg1[%c0_36, %c28] : memref<8x32xf32, #tpu.memory_space<vmem>>, vector<8x1xf32>
    %281 = vector.shape_cast %280 : vector<8x1xf32> to vector<8x1x1xf32>
    %c28_i32 = arith.constant 28 : i32
    %282 = vector.broadcast %c28_i32 : i32 to vector<1x16x16xi32>
    %283 = arith.cmpi eq, %26, %282 : vector<1x16x16xi32>
    %284 = vector.shape_cast %283 : vector<1x16x16xi1> to vector<1x16x16xi1>
    %285 = vector.broadcast %284 : vector<1x16x16xi1> to vector<8x16x16xi1>
    %286 = vector.shape_cast %281 : vector<8x1x1xf32> to vector<8x1x1xf32>
    %287 = vector.broadcast %286 : vector<8x1x1xf32> to vector<8x16x16xf32>
    %288 = arith.select %285, %287, %279 : vector<8x16x16xi1>, vector<8x16x16xf32>
    %c0_37 = arith.constant 0 : index
    %c29 = arith.constant 29 : index
    %289 = vector.load %arg1[%c0_37, %c29] : memref<8x32xf32, #tpu.memory_space<vmem>>, vector<8x1xf32>
    %290 = vector.shape_cast %289 : vector<8x1xf32> to vector<8x1x1xf32>
    %c29_i32 = arith.constant 29 : i32
    %291 = vector.broadcast %c29_i32 : i32 to vector<1x16x16xi32>
    %292 = arith.cmpi eq, %26, %291 : vector<1x16x16xi32>
    %293 = vector.shape_cast %292 : vector<1x16x16xi1> to vector<1x16x16xi1>
    %294 = vector.broadcast %293 : vector<1x16x16xi1> to vector<8x16x16xi1>
    %295 = vector.shape_cast %290 : vector<8x1x1xf32> to vector<8x1x1xf32>
    %296 = vector.broadcast %295 : vector<8x1x1xf32> to vector<8x16x16xf32>
    %297 = arith.select %294, %296, %288 : vector<8x16x16xi1>, vector<8x16x16xf32>
    %c0_38 = arith.constant 0 : index
    %c30 = arith.constant 30 : index
    %298 = vector.load %arg1[%c0_38, %c30] : memref<8x32xf32, #tpu.memory_space<vmem>>, vector<8x1xf32>
    %299 = vector.shape_cast %298 : vector<8x1xf32> to vector<8x1x1xf32>
    %c30_i32 = arith.constant 30 : i32
    %300 = vector.broadcast %c30_i32 : i32 to vector<1x16x16xi32>
    %301 = arith.cmpi eq, %26, %300 : vector<1x16x16xi32>
    %302 = vector.shape_cast %301 : vector<1x16x16xi1> to vector<1x16x16xi1>
    %303 = vector.broadcast %302 : vector<1x16x16xi1> to vector<8x16x16xi1>
    %304 = vector.shape_cast %299 : vector<8x1x1xf32> to vector<8x1x1xf32>
    %305 = vector.broadcast %304 : vector<8x1x1xf32> to vector<8x16x16xf32>
    %306 = arith.select %303, %305, %297 : vector<8x16x16xi1>, vector<8x16x16xf32>
    %c0_39 = arith.constant 0 : index
    %c31 = arith.constant 31 : index
    %307 = vector.load %arg1[%c0_39, %c31] : memref<8x32xf32, #tpu.memory_space<vmem>>, vector<8x1xf32>
    %308 = vector.shape_cast %307 : vector<8x1xf32> to vector<8x1x1xf32>
    %c31_i32_40 = arith.constant 31 : i32
    %309 = vector.broadcast %c31_i32_40 : i32 to vector<1x16x16xi32>
    %310 = arith.cmpi eq, %26, %309 : vector<1x16x16xi32>
    %311 = vector.shape_cast %310 : vector<1x16x16xi1> to vector<1x16x16xi1>
    %312 = vector.broadcast %311 : vector<1x16x16xi1> to vector<8x16x16xi1>
    %313 = vector.shape_cast %308 : vector<8x1x1xf32> to vector<8x1x1xf32>
    %314 = vector.broadcast %313 : vector<8x1x1xf32> to vector<8x16x16xf32>
    %315 = arith.select %312, %314, %306 : vector<8x16x16xi1>, vector<8x16x16xf32>
    %c0_41 = arith.constant 0 : index
    %c0_42 = arith.constant 0 : index
    %c0_43 = arith.constant 0 : index
    %316 = vector.load %arg2[%c0_41, %c0_42, %c0_43] : memref<8x16x16xf32, #tpu.memory_space<vmem>>, vector<8x16x16xf32>
    tpu.vector_store %arg2[%c0_41, %c0_42, %c0_43], %315 {strides = array<i32>} : memref<8x16x16xf32, #tpu.memory_space<vmem>>, vector<8x16x16xf32>,
    return
  }
  func.func @transform_0(%arg0: i32) -> (i32, i32) {
    %c0_i32 = arith.constant 0 : i32
    %c0_i32_0 = arith.constant 0 : i32
    %c0_i32_1 = arith.constant 0 : i32
    return %c0_i32, %c0_i32_0 : i32, i32
  }
  func.func @transform_1(%arg0: i32) -> (i32, i32, i32) {
    %c0_i32 = arith.constant 0 : i32
    %c0_i32_0 = arith.constant 0 : i32
    %c0_i32_1 = arith.constant 0 : i32
    return %c0_i32, %arg0, %c0_i32_0 : i32, i32, i32
  }
}

</mosaic_0001>

<bundles_post_ra>
// kernel: tpu_custom_call.1
= control target key start
LH: loop header
LB: loop body
LE: loop exit
PB: predicated region body
PF: predicated region fallthrough
CT: control target
= control target key end

     0   :  { %6 = vsyncpa [#allocation3], 0  ;;  %s6332_s0 = inlined_call_operand.hbm [shape: f32[8,32], index: 0, kind: input, shape index: {}]   ;;  %s6333_s1 = inlined_call_operand.hbm [shape: f32[8,16,16], index: 1, kind: output, shape index: {}]  }
   0x1   :  { %7 = vsyncpa [#allocation4], 0  ;;  %s4642_s6 = smov [#allocation2]   ;;  %s4594_s10 = scalar_lea.hbm %s6332_s0, 128 }
   0x2   :  { %s14_s7 = sshll.u32 %s4642_s6, 4  ;;  %p4595_p0 = scmp.ne.s32.totalorder %s6332_s0, %s4594_s10  ;;  %s15_s7 = int_to_ptr.vmem [resolvable:$true] %s14_s7 }
   0x3   :  { %p4598_p1 = scmp.lt.u32.totalorder %s4594_s10, %s6332_s0 }
   0x5   :  { %p4600_p2 = pnand %p4598_p1, %p4595_p0 }
   0x7   :  { %4603 = shalt.err (!%p4600_p2)
}
   0x8   :  { %s4604_s15 = scalar_lea.vmem %s15_s7, 128  ;;  %p4609_p4 = scmp.lt.s32.totalorder %s15_s7, %s15_s7 }
   0x9   :  { %p4605_p3 = scmp.ne.s32.totalorder %s15_s7, %s4604_s15  ;;  %p4610_p5 = scmp.lt.s32.totalorder %s4604_s15, %s4604_s15 }
   0xb   :  { %p4611_p6 = por %p4610_p5, %p4609_p4 }
   0xd   :  { %p4612_p7 = pnand %p4611_p6, %p4605_p3 }
   0xf   :  { %4615 = shalt.err (!%p4612_p7)
}
  0x10   :  { %17 = dma.hbm_to_vmem [thread:$0]  %s6332_s0, 128, %s15_s7, [#allocation3]  }
  0x11   :  { %4638 = dma.done.wait [#allocation3], 128  }
  0x12   :  { %4639 = vsyncadd [#allocation3], 4294967168  ;;  %v22_v0 = vlaneseq  ;;  %v4643_v1 = vmov 0   ;;  %v4644_v2 = vmov 1966171168   ;;  %v66_v10 = vld [vmem:[#allocation2] sm:$0xff] }
  0x13   :  { %4523 = vset.pattern.permute.xlu0 %v4643_v1  ;;  %v70_v3 = vunpack.c.l.s4 %v4644_v2  ;;  %4524 = vset.pattern.permute.xlu1 %v4643_v1  ;;  %v68_v13 = vcombine.high %v66_v10, %v66_v10  ;;  %v4645_v32 = vmov 1   ;;  %v4646_v35 = vmov 2   ;;  %v1710_v63 = vld [vmem:[#allocation2] sm:$0xff]  ;;  %s4676_s0 = smov [#allocation5]  }
  0x14   :  { %v23_v4 = vshrl.u32 %v22_v0, 7  ;;  %v29_v6 = vand.u32 127, %v22_v0  ;;  %v4647_v36 = vmov 3   ;;  %v4648_v37 = vmov 4   ;;  %s4472_s18 = sshll.u32 %s4676_s0, 4  ;;  %s4473_s18 = int_to_ptr.vmem [resolvable:$true] %s4472_s18 }
  0x15   :  { %v71_v5 = vunpack.c.0.s8 %v70_v3  ;;  %v4649_v38 = vmov 5   ;;  %v4650_v39 = vmov 6   ;;  %v4651_v40 = vmov 7   ;;  %s4616_s19 = scalar_lea.vmem %s4473_s18, 2048  ;;  %p4621_p9 = scmp.lt.s32.totalorder %s4473_s18, %s4473_s18 }
  0x16   :  { %v24_v7 = vadd.s32 8, %v23_v4  ;;  %v4706_v12 = vsub.s32 0, %v23_v4  ;;  %v4710_v17 = vsub.s32 %v23_v4, %v29_v6  ;;  %v4652_v41 = vmov 8   ;;  %p4617_p8 = scmp.ne.s32.totalorder %s4473_s18, %s4616_s19  ;;  %p4622_p10 = scmp.lt.s32.totalorder %s4616_s19, %s4616_s19 }
  0x17   :  { %v4701_v8 = vsub.s32 %v71_v5, %v23_v4  ;;  %v4653_v47 = vmov 9   ;;  %v4654_v56 = vmov 10   ;;  %v4655_v0 = vmov 11  }
  0x18   :  { %v4703_v9 = vsub.s32 %v24_v7, %v29_v6  ;;  %6396 = vst [vmem:[#allocation9_spill] sm:$0xff] %v4706_v12  ;;  %v1712_v5 = vcombine.high %v1710_v63, %v1710_v63  ;;  %vm32_vm0 = vcmp.gt.s32.totalorder %v4710_v17, 0  ;;  %vm6385_vm9 = vcmask 130048   ;;  %p4623_p11 = por %p4622_p10, %p4621_p9 }
  0x19   :  { %v75_v11 = vrot.slane %v66_v10, %v4701_v8  ;;  %v82_v16 = vrot.slane %v68_v13, %v4701_v8 }
  0x1a   :  { %6395 = vst [vmem:[#allocation8_spill] sm:$0xff] %v4703_v9  ;;  %p4624_p12 = pnand %p4623_p11, %p4617_p8 }
  0x1b   :  { %v91_v14 = vrot.slane %v75_v11, %v4701_v8  ;;  %v83_v15 = vcombine.high %v75_v11, %v75_v11  ;;  %v84_v21 = vcombine.high %v82_v16, %v82_v16  ;;  %v98_v25 = vrot.slane %v82_v16, %v4701_v8 }
  0x1c   :  { %v1726_v11 = vrot.slane %v1712_v5, %v4701_v8 }
  0x1d   :  { %v4713_v18 = vrot.slane %v91_v14, %v4706_v12  ;;  %v113_v19 = vcombine.high %v91_v14, %v91_v14  ;;  %v105_v20 = vrot.slane %v83_v15, %v4701_v8  ;;  %v112_v27 = vrot.slane %v84_v21, %v4701_v8 }
  0x1e   :  { %v4731_v28 = vrot.slane %v98_v25, %v4706_v12  ;;  %v114_v29 = vcombine.high %v98_v25, %v98_v25  ;;  %v1742_v16 = vrot.slane %v1726_v11, %v4701_v8  ;;  %v4656_v21 = vmov 12  }
  0x1f   :  { %156 = vperm.xlu0 %4523, %v4713_v18   ;;  %v4718_v22 = vrot.slane %v113_v19, %v4706_v12  ;;  %v4721_v23 = vrot.slane %v105_v20, %v4706_v12  ;;  %v115_v24 = vcombine.high %v105_v20, %v105_v20  ;;  %v4735_v30 = vrot.slane %v112_v27, %v4706_v12 }
  0x20   :  { %v4739_v31 = vrot.slane %v114_v29, %v4706_v12  ;;  %v116_v33 = vcombine.high %v112_v27, %v112_v27  ;;  %v1758_v25 = vcombine.high %v1742_v16, %v1742_v16 }
  0x21   :  { %164 = vperm.xlu1 %4524, %v4718_v22   ;;  %v4726_v26 = vrot.slane %v115_v24, %v4706_v12  ;;  %v4890_v24 = vrot.slane %v1742_v16, %v4706_v12 }
  0x22   :  { %v4747_v34 = vrot.slane %v116_v33, %v4706_v12 }
  0x23   :  { %160 = vperm.xlu0 %4523, %v4721_v23  }
  0x25   :  { %168 = vperm.xlu1 %4524, %v4726_v26  }
  0x27   :  { %172 = vperm.xlu0 %4523, %v4731_v28  }
  0x29   :  { %176 = vperm.xlu1 %4524, %v4735_v30  }
  0x2b   :  { %180 = vperm.xlu0 %4523, %v4739_v31  }
  0x2d   :  { %4526 = vset.pattern.permute.xlu1 %v4645_v32 }
  0x2e   :  { %297 = vperm.xlu1 %4526, %v4721_v23  }
  0x2f   :  { %4525 = vset.pattern.permute.xlu0 %v4645_v32 }
  0x30   :  { %293 = vperm.xlu0 %4525, %v4713_v18  }
  0x32   :  { %301 = vperm.xlu1 %4526, %v4718_v22  }
  0x34   :  { %305 = vperm.xlu0 %4525, %v4726_v26  }
  0x36   :  { %4527 = vset.pattern.permute.xlu1 %v4643_v1  ;;  %v1719_v1 = vrot.slane %v1710_v63, %v4701_v8 }
  0x37   :  { %184 = vperm.xlu1 %4527, %v4747_v34  }
  0x38   :  { %313 = vperm.xlu0 %4525, %v4735_v30   ;;  %v1727_v4 = vcombine.high %v1719_v1, %v1719_v1  ;;  %v1735_v33 = vrot.slane %v1719_v1, %v4701_v8 }
  0x3a   :  { %v1749_v10 = vrot.slane %v1727_v4, %v4701_v8 }
  0x3b   :  { %4528 = vset.pattern.permute.xlu1 %v4645_v32  ;;  %v4899_v32 = vrot.slane %v1758_v25, %v4706_v12 }
  0x3c   :  { %321 = vperm.xlu0 %4525, %v4747_v34   ;;  %309 = vperm.xlu1 %4528, %v4731_v28   ;;  %v4879_v15 = vrot.slane %v1749_v10, %v4706_v12 }
  0x40   :  { %4530 = vset.pattern.permute.xlu0 %v4646_v35  ;;  %317 = vperm.xlu1 %4528, %v4739_v31  }
  0x41   :  { %434 = vperm.xlu0 %4530, %v4721_v23  }
  0x44   :  { %4529 = vset.pattern.permute.xlu1 %v4646_v35 }
  0x45   :  { %446 = vperm.xlu0 %4530, %v4731_v28   ;;  %430 = vperm.xlu1 %4529, %v4713_v18  }
  0x49   :  { %454 = vperm.xlu0 %4530, %v4739_v31   ;;  %438 = vperm.xlu1 %4529, %v4718_v22  }
  0x4d   :  { %4531 = vset.pattern.permute.xlu0 %v4647_v36  ;;  %442 = vperm.xlu1 %4529, %v4726_v26  }
  0x4e   :  { %567 = vperm.xlu0 %4531, %v4713_v18  }
  0x51   :  { %450 = vperm.xlu1 %4529, %v4735_v30  }
  0x52   :  { %579 = vperm.xlu0 %4531, %v4726_v26  }
  0x55   :  { %458 = vperm.xlu1 %4529, %v4747_v34  }
  0x56   :  { %587 = vperm.xlu0 %4531, %v4735_v30  }
  0x59   :  { %4532 = vset.pattern.permute.xlu1 %v4647_v36 }
  0x5a   :  { %595 = vperm.xlu0 %4531, %v4747_v34   ;;  %571 = vperm.xlu1 %4532, %v4721_v23  }
  0x5e   :  { %4534 = vset.pattern.permute.xlu0 %v4648_v37  ;;  %575 = vperm.xlu1 %4532, %v4718_v22  }
  0x5f   :  { %708 = vperm.xlu0 %4534, %v4721_v23  }
  0x62   :  { %583 = vperm.xlu1 %4532, %v4731_v28  }
  0x63   :  { %720 = vperm.xlu0 %4534, %v4731_v28  }
  0x66   :  { %591 = vperm.xlu1 %4532, %v4739_v31  }
  0x67   :  { %728 = vperm.xlu0 %4534, %v4739_v31  }
  0x6a   :  { %4533 = vset.pattern.permute.xlu1 %v4648_v37  ;;  %v1759_v37 = vcombine.high %v1749_v10, %v1749_v10 }
  0x6b   :  { %4535 = vset.pattern.permute.xlu0 %v4649_v38  ;;  %704 = vperm.xlu1 %4533, %v4713_v18  }
  0x6c   :  { %841 = vperm.xlu0 %4535, %v4713_v18  }
  0x6f   :  { %712 = vperm.xlu1 %4533, %v4718_v22  }
  0x70   :  { %853 = vperm.xlu0 %4535, %v4726_v26  }
  0x73   :  { %716 = vperm.xlu1 %4533, %v4726_v26  }
  0x74   :  { %861 = vperm.xlu0 %4535, %v4735_v30  }
  0x77   :  { %724 = vperm.xlu1 %4533, %v4735_v30  }
  0x78   :  { %869 = vperm.xlu0 %4535, %v4747_v34  }
  0x7b   :  { %732 = vperm.xlu1 %4533, %v4747_v34  }
  0x7c   :  { %4538 = vset.pattern.permute.xlu0 %v4650_v39 }
  0x7d   :  { %982 = vperm.xlu0 %4538, %v4721_v23  }
  0x7f   :  { %4536 = vset.pattern.permute.xlu1 %v4649_v38  ;;  %v1728_v38 = vcombine.high %v1726_v11, %v1726_v11 }
  0x80   :  { %845 = vperm.xlu1 %4536, %v4721_v23  }
  0x81   :  { %994 = vperm.xlu0 %4538, %v4731_v28  }
  0x84   :  { %849 = vperm.xlu1 %4536, %v4718_v22  }
  0x85   :  { %1002 = vperm.xlu0 %4538, %v4739_v31  }
  0x88   :  { %857 = vperm.xlu1 %4536, %v4731_v28  }
  0x89   :  { %4539 = vset.pattern.permute.xlu0 %v4651_v40 }
  0x8a   :  { %1115 = vperm.xlu0 %4539, %v4713_v18  }
  0x8c   :  { %865 = vperm.xlu1 %4536, %v4739_v31  }
  0x8e   :  { %1127 = vperm.xlu0 %4539, %v4726_v26  }
  0x90   :  { %4537 = vset.pattern.permute.xlu1 %v4650_v39  ;;  %v4909_v39 = vrot.slane %v1735_v33, %v4706_v12 }
  0x91   :  { %978 = vperm.xlu1 %4537, %v4713_v18  }
  0x92   :  { %1135 = vperm.xlu0 %4539, %v4735_v30  }
  0x95   :  { %986 = vperm.xlu1 %4537, %v4718_v22  }
  0x96   :  { %1143 = vperm.xlu0 %4539, %v4747_v34  }
  0x99   :  { %990 = vperm.xlu1 %4537, %v4726_v26  }
  0x9a   :  { %4542 = vset.pattern.permute.xlu0 %v4652_v41 }
  0x9b   :  { %1256 = vperm.xlu0 %4542, %v4721_v23  }
  0x9d   :  { %998 = vperm.xlu1 %4537, %v4735_v30  }
  0x9e   :  { %v4799_v42 = vpop.permute.xlu0 %156 }
  0x9f   :  { %6397 = vst [vmem:[#allocation10_spill] sm:$0xff] %v4799_v42  ;;  %1268 = vperm.xlu0 %4542, %v4731_v28  }
  0xa0   :  { %v4802_v43 = vpop.permute.xlu1 %164 }
  0xa1   :  { %6398 = vst [vmem:[#allocation11_spill] sm:$0xff] %v4802_v43  ;;  %1006 = vperm.xlu1 %4537, %v4747_v34  }
  0xa2   :  { %v4805_v44 = vpop.permute.xlu0 %160 }
  0xa3   :  { %1276 = vperm.xlu0 %4542, %v4739_v31  }
  0xa4   :  { %v4808_v45 = vpop.permute.xlu1 %168 }
  0xa5   :  { %6399 = vst [vmem:[#allocation12_spill] sm:$0xff] %v4808_v45  ;;  %4540 = vset.pattern.permute.xlu1 %v4651_v40 }
  0xa6   :  { %1119 = vperm.xlu1 %4540, %v4721_v23   ;;  %v4811_v46 = vpop.permute.xlu0 %172 }
  0xa7   :  { %4543 = vset.pattern.permute.xlu0 %v4653_v47 }
  0xa8   :  { %v4813_v48 = vpop.permute.xlu1 %176  ;;  %1389 = vperm.xlu0 %4543, %v4713_v18  }
  0xaa   :  { %1123 = vperm.xlu1 %4540, %v4718_v22   ;;  %v4817_v49 = vpop.permute.xlu0 %180 }
  0xac   :  { %1401 = vperm.xlu0 %4543, %v4726_v26  }
  0xad   :  { %v4820_v50 = vpop.permute.xlu1 %297 }
  0xae   :  { %1131 = vperm.xlu1 %4540, %v4731_v28  }
  0xaf   :  { %v4823_v51 = vpop.permute.xlu0 %293 }
  0xb0   :  { %6400 = vst [vmem:[#allocation13_spill] sm:$0xff] %v4823_v51  ;;  %1409 = vperm.xlu0 %4543, %v4735_v30  }
  0xb1   :  { %v4826_v52 = vpop.permute.xlu1 %301 }
  0xb2   :  { %6401 = vst [vmem:[#allocation14_spill] sm:$0xff] %v4826_v52  ;;  %1139 = vperm.xlu1 %4540, %v4739_v31  }
  0xb3   :  { %v4829_v53 = vpop.permute.xlu0 %305 }
  0xb4   :  { %1417 = vperm.xlu0 %4543, %v4747_v34  }
  0xb6   :  { %4541 = vset.pattern.permute.xlu1 %v4652_v41  ;;  %v4832_v54 = vpop.permute.xlu1 %184 }
  0xb7   :  { %v4834_v55 = vpop.permute.xlu0 %313  ;;  %1252 = vperm.xlu1 %4541, %v4713_v18  }
  0xb8   :  { %4546 = vset.pattern.permute.xlu0 %v4654_v56 }
  0xb9   :  { %1530 = vperm.xlu0 %4546, %v4721_v23  }
  0xbb   :  { %v4838_v57 = vpop.permute.xlu0 %321  ;;  %1260 = vperm.xlu1 %4541, %v4718_v22   ;;  %v4841_v58 = vpop.permute.xlu1 %309 }
  0xbc   :  { %6402 = vst [vmem:[#allocation15_spill] sm:$0xff] %v4838_v57 }
  0xbd   :  { %1542 = vperm.xlu0 %4546, %v4731_v28  }
  0xbf   :  { %1264 = vperm.xlu1 %4541, %v4726_v26   ;;  %v4845_v59 = vpop.permute.xlu1 %317 }
  0xc0   :  { %v4847_v60 = vpop.permute.xlu0 %434 }
  0xc1   :  { %1550 = vperm.xlu0 %4546, %v4739_v31  }
  0xc3   :  { %1272 = vperm.xlu1 %4541, %v4735_v30  }
  0xc4   :  { %v4851_v61 = vpop.permute.xlu0 %446  ;;  %v4853_v62 = vpop.permute.xlu1 %430 }
  0xc5   :  { %6403 = vst [vmem:[#allocation16_spill] sm:$0xff] %v4853_v62  ;;  %4547 = vset.pattern.permute.xlu0 %v4655_v0 }
  0xc6   :  { %1663 = vperm.xlu0 %4547, %v4713_v18  }
  0xc7   :  { %1280 = vperm.xlu1 %4541, %v4747_v34  }
  0xc8   :  { %v4859_v2 = vpop.permute.xlu0 %454  ;;  %v4861_v3 = vpop.permute.xlu1 %438 }
  0xc9   :  { %6404 = vst [vmem:[#allocation17_spill] sm:$0xff] %v4861_v3 }
  0xca   :  { %1675 = vperm.xlu0 %4547, %v4726_v26  }
  0xcb   :  { %4544 = vset.pattern.permute.xlu1 %v4653_v47  ;;  %v6335_v47 = vmov 13  }
  0xcc   :  { %1393 = vperm.xlu1 %4544, %v4721_v23   ;;  %v4865_v6 = vpop.permute.xlu1 %442 }
  0xcd   :  { %v4867_v7 = vpop.permute.xlu0 %567 }
  0xce   :  { %6405 = vst [vmem:[#allocation18_spill] sm:$0xff] %v4867_v7  ;;  %1683 = vperm.xlu0 %4547, %v4735_v30  }
  0xd0   :  { %1397 = vperm.xlu1 %4544, %v4718_v22   ;;  %v4873_v13 = vpop.permute.xlu1 %450 }
  0xd1   :  { %6406 = vst [vmem:[#allocation19_spill] sm:$0xff] %v4873_v13  ;;  %v4875_v14 = vpop.permute.xlu0 %579 }
  0xd2   :  { %1691 = vperm.xlu0 %4547, %v4747_v34  }
  0xd4   :  { %1405 = vperm.xlu1 %4544, %v4731_v28   ;;  %v4883_v19 = vpop.permute.xlu1 %458 }
  0xd5   :  { %6407 = vst [vmem:[#allocation20_spill] sm:$0xff] %v4883_v19  ;;  %v4885_v20 = vpop.permute.xlu0 %587 }
  0xd6   :  { %6408 = vst [vmem:[#allocation21_spill] sm:$0xff] %v4885_v20  ;;  %4550 = vset.pattern.permute.xlu0 %v4656_v21 }
  0xd7   :  { %1804 = vperm.xlu0 %4550, %v4879_v15  }
  0xd8   :  { %1413 = vperm.xlu1 %4544, %v4739_v31  }
  0xd9   :  { %v4893_v27 = vpop.permute.xlu0 %595  ;;  %v4895_v29 = vpop.permute.xlu1 %571 }
  0xda   :  { %6409 = vst [vmem:[#allocation22_spill] sm:$0xff] %v4893_v27 }
  0xdb   :  { %1816 = vperm.xlu0 %4550, %v4890_v24  }
  0xdc   :  { %4545 = vset.pattern.permute.xlu1 %v4654_v56  ;;  %v1756_v56 = vrot.slane %v1728_v38, %v4701_v8  ;;  %v6334_v38 = vmov 14  }
  0xdd   :  { %1526 = vperm.xlu1 %4545, %v4713_v18   ;;  %v4903_v35 = vpop.permute.xlu1 %575  ;;  %v4919_v18 = vrot.slane %v1759_v37, %v4706_v12 }
  0xde   :  { %6410 = vst [vmem:[#allocation23_spill] sm:$0xff] %v4903_v35  ;;  %v4905_v36 = vpop.permute.xlu0 %708  ;;  %v4929_v4 = vrot.slane %v1756_v56, %v4706_v12  ;;  %v1897_v5 = vcombine.high %v1756_v56, %v1756_v56 }
  0xdf   :  { %1824 = vperm.xlu0 %4550, %v4899_v32  }
  0xe1   :  { %1534 = vperm.xlu1 %4545, %v4718_v22   ;;  %v4912_v40 = vpop.permute.xlu1 %583 }
  0xe2   :  { %v4914_v41 = vpop.permute.xlu0 %720 }
  0xe3   :  { %4551 = vset.pattern.permute.xlu0 %v6335_v47  ;;  %v6337_v47 = vmov 15  }
  0xe4   :  { %1937 = vperm.xlu0 %4551, %v4909_v39  }
  0xe5   :  { %1538 = vperm.xlu1 %4545, %v4726_v26   ;;  %v4923_v63 = vpop.permute.xlu1 %591  ;;  %v4938_v26 = vrot.slane %v1897_v5, %v4706_v12 }
  0xe6   :  { %v4925_v1 = vpop.permute.xlu0 %728 }
  0xe8   :  { %1949 = vperm.xlu0 %4551, %v4919_v18  }
  0xe9   :  { %1546 = vperm.xlu1 %4545, %v4735_v30  }
  0xea   :  { %v4932_v10 = vpop.permute.xlu1 %704 }
  0xeb   :  { %6411 = vst [vmem:[#allocation24_spill] sm:$0xff] %v4932_v10  ;;  %v4934_v11 = vpop.permute.xlu0 %841 }
  0xec   :  { %6412 = vst [vmem:[#allocation25_spill] sm:$0xff] %v4934_v11  ;;  %1957 = vperm.xlu0 %4551, %v4929_v4  }
  0xed   :  { %1554 = vperm.xlu1 %4545, %v4747_v34  }
  0xee   :  { %v4941_v16 = vpop.permute.xlu1 %712 }
  0xef   :  { %6413 = vst [vmem:[#allocation26_spill] sm:$0xff] %v4941_v16  ;;  %v4943_v25 = vpop.permute.xlu0 %853 }
  0xf0   :  { %6414 = vst [vmem:[#allocation27_spill] sm:$0xff] %v4943_v25  ;;  %1965 = vperm.xlu0 %4551, %v4938_v26  }
  0xf1   :  { %4548 = vset.pattern.permute.xlu1 %v4655_v0 }
  0xf2   :  { %1667 = vperm.xlu1 %4548, %v4721_v23   ;;  %v4948_v30 = vpop.permute.xlu1 %716 }
  0xf3   :  { %6415 = vst [vmem:[#allocation28_spill] sm:$0xff] %v4948_v30  ;;  %v4950_v37 = vpop.permute.xlu0 %861 }
  0xf4   :  { %6416 = vst [vmem:[#allocation29_spill] sm:$0xff] %v4950_v37  ;;  %4554 = vset.pattern.permute.xlu0 %v6334_v38  ;;  %v4971_v38 = vsel %vm32_vm0, %v4710_v17, 0 }
  0xf5   :  { %2078 = vperm.xlu0 %4554, %v4879_v15   ;;  %vm117_vm1 = vcmp.eq.s32.totalorder %v4971_v38, 0  ;;  %vm254_vm2 = vcmp.eq.s32.totalorder %v4971_v38, 1  ;;  %vm528_vm3 = vcmp.eq.s32.totalorder %v4971_v38, 3  ;;  %vm391_vm4 = vcmp.eq.s32.totalorder %v4971_v38, 2 }
  0xf6   :  { %1671 = vperm.xlu1 %4548, %v4718_v22   ;;  %v4955_v34 = vpop.permute.xlu1 %724  ;;  %v1757_v22 = vcombine.high %v1735_v33, %v1735_v33  ;;  %v187_v17 = vsel %vm117_vm1, %v4799_v42, 0.0  ;;  %vm665_vm5 = vcmp.eq.s32.totalorder %v4971_v38, 4  ;;  %vm802_vm6 = vcmp.eq.s32.totalorder %v4971_v38, 5 }
  0xf7   :  { %6417 = vst [vmem:[#allocation30_spill] sm:$0xff] %v4955_v34  ;;  %v4957_v56 = vpop.permute.xlu0 %869  ;;  %v324_v33 = vsel %vm254_vm2, %v4823_v51, %v187_v17  ;;  %vm1076_vm7 = vcmp.eq.s32.totalorder %v4971_v38, 7  ;;  %vm939_vm8 = vcmp.eq.s32.totalorder %v4971_v38, 6  ;;  %v6437_v38 = vmov 15  }
  0xf8   :  { %6418 = vst [vmem:[#allocation31_spill] sm:$0xff] %v4957_v56  ;;  %v4982_v9 = vrot.slane %v1757_v22, %v4706_v12 }
  0xf9   :  { %2090 = vperm.xlu0 %4554, %v4890_v24  }
  0xfa   :  { %1679 = vperm.xlu1 %4548, %v4731_v28   ;;  %v4961_v23 = vpop.permute.xlu1 %732 }
  0xfb   :  { %6419 = vst [vmem:[#allocation32_spill] sm:$0xff] %v4961_v23 }
  0xfc   :  { %v4966_v0 = vpop.permute.xlu0 %982 }
  0xfd   :  { %2098 = vperm.xlu0 %4554, %v4899_v32  }
  0xfe   :  { %1687 = vperm.xlu1 %4548, %v4739_v31  }
  0xff   :  { %v4968_v5 = vpop.permute.xlu1 %845 }
 0x100   :  { %v4975_v28 = vpop.permute.xlu0 %994 }
 0x101   :  { %4555 = vset.pattern.permute.xlu0 %v6337_v47  ;;  %v461_v47 = vsel %vm391_vm4, %v4853_v62, %v324_v33  ;;  %v6347_v62 = vmov 16  }
 0x102   :  { %4549 = vset.pattern.permute.xlu1 %v4656_v21  ;;  %2211 = vperm.xlu0 %4555, %v4909_v39   ;;  %v598_v17 = vsel %vm528_vm3, %v4867_v7, %v461_v47 }
 0x103   :  { %1800 = vperm.xlu1 %4549, %v4909_v39   ;;  %v4979_v31 = vpop.permute.xlu1 %849  ;;  %v735_v51 = vsel %vm665_vm5, %v4932_v10, %v598_v17  ;;  %v193_v17 = vsel %vm117_vm1, %v4808_v45, 0.0 }
 0x104   :  { %6420 = vst [vmem:[#allocation33_spill] sm:$0xff] %v4979_v31  ;;  %v4996_v22 = vpop.permute.xlu0 %1002  ;;  %v872_v47 = vsel %vm802_vm6, %v4934_v11, %v735_v51  ;;  %v330_v7 = vsel %vm254_vm2, %v4829_v53, %v193_v17  ;;  %v197_v17 = vsel %vm117_vm1, %v4813_v48, 0.0 }
 0x105   :  { %v467_v45 = vsel %vm391_vm4, %v4865_v6, %v330_v7 }
 0x106   :  { %2223 = vperm.xlu0 %4555, %v4919_v18  }
 0x107   :  { %1808 = vperm.xlu1 %4549, %v4982_v9   ;;  %v4991_v21 = vpop.permute.xlu1 %857 }
 0x109   :  { %v5015_v12 = vpop.permute.xlu0 %1115 }
 0x10a   :  { %2231 = vperm.xlu0 %4555, %v4929_v4   ;;  %6421 = vst [vmem:[#allocation34_spill] sm:$0xff] %v5015_v12 }
 0x10b   :  { %1812 = vperm.xlu1 %4549, %v4919_v18   ;;  %v5005_v42 = vpop.permute.xlu1 %865 }
 0x10d   :  { %v5038_v11 = vpop.permute.xlu0 %1127 }
 0x10e   :  { %2239 = vperm.xlu0 %4555, %v4938_v26   ;;  %6422 = vst [vmem:[#allocation35_spill] sm:$0xff] %v5038_v11 }
 0x10f   :  { %1820 = vperm.xlu1 %4549, %v4929_v4  }
 0x110   :  { %v5024_v33 = vpop.permute.xlu1 %978 }
 0x111   :  { %v1009_v10 = vsel %vm939_vm8, %v5024_v33, %v872_v47  ;;  %v604_v47 = vsel %vm528_vm3, %v4875_v14, %v467_v45 }
 0x112   :  { %v1146_v51 = vsel %vm1076_vm7, %v5015_v12, %v1009_v10  ;;  %4558 = vset.pattern.permute.xlu0 %v6347_v62  ;;  %v741_v7 = vsel %vm665_vm5, %v4948_v30, %v604_v47  ;;  %v6424_v12 = vmov 13  }
 0x113   :  { %4451 = vst.msk [vmem:[#allocation5] sm:$0xff] %vm6385_vm9, %v1146_v51  ;;  %1828 = vperm.xlu1 %4549, %v4938_v26   ;;  %2352 = vperm.xlu0 %4558, %v4879_v15   ;;  %v334_v51 = vsel %vm254_vm2, %v4834_v55, %v197_v17  ;;  %v878_v47 = vsel %vm802_vm6, %v4943_v25, %v741_v7  ;;  %v5075_v17 = vpop.permute.xlu0 %1135 }
 0x114   :  { %v5050_v10 = vpop.permute.xlu1 %986  ;;  %v471_v62 = vsel %vm391_vm4, %v4873_v13, %v334_v51  ;;  %6426 = vst [vmem:[#allocation38_spill] sm:$0xff] %v5075_v17 }
 0x115   :  { %6423 = vst [vmem:[#allocation36_spill] sm:$0xff] %v5050_v10  ;;  %v608_v45 = vsel %vm528_vm3, %v4885_v20, %v471_v62  ;;  %v189_v20 = vsel %vm117_vm1, %v4805_v44, 0.0 }
 0x116   :  { %v745_v51 = vsel %vm665_vm5, %v4955_v34, %v608_v45 }
 0x117   :  { %4552 = vset.pattern.permute.xlu1 %v6424_v12  ;;  %2364 = vperm.xlu0 %4558, %v4890_v24   ;;  %v201_v12 = vsel %vm117_vm1, %v4832_v54, 0.0 }
 0x118   :  { %1941 = vperm.xlu1 %4552, %v4879_v15   ;;  %v5073_v30 = vpop.permute.xlu1 %990  ;;  %v338_v7 = vsel %vm254_vm2, %v4838_v57, %v201_v12  ;;  %v882_v12 = vsel %vm802_vm6, %v4950_v37, %v745_v51 }
 0x119   :  { %6425 = vst [vmem:[#allocation37_spill] sm:$0xff] %v5073_v30  ;;  %v1015_v62 = vsel %vm939_vm8, %v5073_v30, %v878_v47  ;;  %v475_v45 = vsel %vm391_vm4, %v4883_v19, %v338_v7 }
 0x11a   :  { %v1152_v25 = vsel %vm1076_vm7, %v5038_v11, %v1015_v62  ;;  %v612_v47 = vsel %vm528_vm3, %v4893_v27, %v475_v45  ;;  %v326_v45 = vsel %vm254_vm2, %v4820_v50, %v189_v20  ;;  %v5121_v11 = vpop.permute.xlu0 %1143 }
 0x11b   :  { %4457 = vst.msk [vmem:[#allocation5 + $0x30] sm:$0xff] %vm6385_vm9, %v1152_v25  ;;  %2372 = vperm.xlu0 %4558, %v4899_v32   ;;  %v749_v7 = vsel %vm665_vm5, %v4961_v23, %v612_v47  ;;  %6428 = vst [vmem:[#allocation40_spill] sm:$0xff] %v5121_v11  ;;  %v463_v37 = vsel %vm391_vm4, %v4847_v60, %v326_v45  ;;  %v6354_v47 = vmov 17   ;;  %v195_v45 = vsel %vm117_vm1, %v4811_v46, 0.0 }
 0x11c   :  { %1945 = vperm.xlu1 %4552, %v4982_v9   ;;  %v5107_v62 = vpop.permute.xlu1 %998  ;;  %v886_v20 = vsel %vm802_vm6, %v4957_v56, %v749_v7 }
 0x11d   :  { %6427 = vst [vmem:[#allocation39_spill] sm:$0xff] %v5107_v62  ;;  %v1019_v25 = vsel %vm939_vm8, %v5107_v62, %v882_v12  ;;  %v600_v12 = vsel %vm528_vm3, %v4895_v29, %v463_v37 }
 0x11e   :  { %v1156_v51 = vsel %vm1076_vm7, %v5075_v17, %v1019_v25  ;;  %v191_v17 = vsel %vm117_vm1, %v4802_v43, 0.0 }
 0x11f   :  { %4461 = vst.msk [vmem:[#allocation5 + $0x50] sm:$0xff] %vm6385_vm9, %v1156_v51  ;;  %4559 = vset.pattern.permute.xlu0 %v6354_v47  ;;  %v737_v51 = vsel %vm665_vm5, %v4905_v36, %v600_v12  ;;  %v328_v12 = vsel %vm254_vm2, %v4826_v52, %v191_v17 }
 0x120   :  { %1953 = vperm.xlu1 %4552, %v4890_v24   ;;  %v5135_v25 = vpop.permute.xlu1 %1006  ;;  %2485 = vperm.xlu0 %4559, %v4909_v39   ;;  %v874_v7 = vsel %vm802_vm6, %v4968_v5, %v737_v51  ;;  %v5164_v51 = vpop.permute.xlu0 %1256  ;;  %v465_v17 = vsel %vm391_vm4, %v4861_v3, %v328_v12  ;;  %v6443_v3 = vmov 16  }
 0x121   :  { %6429 = vst [vmem:[#allocation41_spill] sm:$0xff] %v5135_v25  ;;  %v1023_v37 = vsel %vm939_vm8, %v5135_v25, %v886_v20  ;;  %v332_v20 = vsel %vm254_vm2, %v4841_v58, %v195_v45  ;;  %v1011_v45 = vsel %vm939_vm8, %v4966_v0, %v874_v7  ;;  %v602_v43 = vsel %vm528_vm3, %v4903_v35, %v465_v17  ;;  %v3080_v25 = vld [vmem:[#allocation2] sm:$0xff] }
 0x122   :  { %v1160_v47 = vsel %vm1076_vm7, %v5121_v11, %v1023_v37  ;;  %v199_v37 = vsel %vm117_vm1, %v4817_v49, 0.0  ;;  %v739_v12 = vsel %vm665_vm5, %v4941_v16, %v602_v43  ;;  %v6430_v35 = vmov 14  }
 0x123   :  { %4465 = vst.msk [vmem:[#allocation5 + $0x70] sm:$0xff] %vm6385_vm9, %v1160_v47  ;;  %v469_v47 = vsel %vm391_vm4, %v4851_v61, %v332_v20  ;;  %v336_v7 = vsel %vm254_vm2, %v4845_v59, %v199_v37  ;;  %v876_v17 = vsel %vm802_vm6, %v4979_v31, %v739_v12  ;;  %v3082_v27 = vcombine.high %v3080_v25, %v3080_v25 }
 0x124   :  { %1961 = vperm.xlu1 %4552, %v4899_v32   ;;  %2497 = vperm.xlu0 %4559, %v4919_v18   ;;  %v606_v11 = vsel %vm528_vm3, %v4912_v40, %v469_v47  ;;  %v5201_v47 = vpop.permute.xlu0 %1268  ;;  %v473_v43 = vsel %vm391_vm4, %v4859_v2, %v336_v7  ;;  %v1013_v37 = vsel %vm939_vm8, %v5050_v10, %v876_v17 }
 0x125   :  { %v5179_v52 = vpop.permute.xlu1 %1119 }
 0x126   :  { %v1148_v20 = vsel %vm1076_vm7, %v5179_v52, %v1011_v45  ;;  %v743_v45 = vsel %vm665_vm5, %v4914_v41, %v606_v11 }
 0x127   :  { %4453 = vst.msk [vmem:[#allocation5 + $0x10] sm:$0xff] %vm6385_vm9, %v1148_v20  ;;  %v880_v12 = vsel %vm802_vm6, %v4991_v21, %v743_v45 }
 0x128   :  { %4553 = vset.pattern.permute.xlu1 %v6430_v35  ;;  %2505 = vperm.xlu0 %4559, %v4929_v4   ;;  %v610_v35 = vsel %vm528_vm3, %v4923_v63, %v473_v43  ;;  %v1017_v17 = vsel %vm939_vm8, %v4975_v28, %v880_v12 }
 0x129   :  { %2074 = vperm.xlu1 %4553, %v4909_v39   ;;  %v5214_v20 = vpop.permute.xlu1 %1123  ;;  %v747_v7 = vsel %vm665_vm5, %v4925_v1, %v610_v35  ;;  %v6361_v35 = vmov 18  }
 0x12a   :  { %6431 = vst [vmem:[#allocation42_spill] sm:$0xff] %v5214_v20  ;;  %v1150_v11 = vsel %vm1076_vm7, %v5214_v20, %v1013_v37  ;;  %v884_v45 = vsel %vm802_vm6, %v5005_v42, %v747_v7 }
 0x12b   :  { %4455 = vst.msk [vmem:[#allocation5 + $0x20] sm:$0xff] %vm6385_vm9, %v1150_v11  ;;  %v5242_v11 = vpop.permute.xlu0 %1276  ;;  %v1021_v12 = vsel %vm939_vm8, %v4996_v22, %v884_v45 }
 0x12c   :  { %2513 = vperm.xlu0 %4559, %v4938_v26   ;;  %6432 = vst [vmem:[#allocation43_spill] sm:$0xff] %v5242_v11  ;;  %v6378_v11 = vmov 23  }
 0x12d   :  { %2082 = vperm.xlu1 %4553, %v4982_v9   ;;  %v5234_v43 = vpop.permute.xlu1 %1131 }
 0x12e   :  { %v1154_v37 = vsel %vm1076_vm7, %v5234_v43, %v1017_v17 }
 0x12f   :  { %4459 = vst.msk [vmem:[#allocation5 + $0x40] sm:$0xff] %vm6385_vm9, %v1154_v37  ;;  %v5257_v17 = vpop.permute.xlu0 %1389 }
 0x130   :  { %4562 = vset.pattern.permute.xlu0 %v6361_v35  ;;  %6433 = vst [vmem:[#allocation44_spill] sm:$0xff] %v5257_v17  ;;  %v6452_v17 = vmov 17  }
 0x131   :  { %2086 = vperm.xlu1 %4553, %v4919_v18   ;;  %v5250_v20 = vpop.permute.xlu1 %1139  ;;  %2626 = vperm.xlu0 %4562, %v4879_v15  }
 0x132   :  { %v1158_v7 = vsel %vm1076_vm7, %v5250_v20, %v1021_v12  ;;  %v6364_v12 = vmov 19  }
 0x133   :  { %4463 = vst.msk [vmem:[#allocation5 + $0x60] sm:$0xff] %vm6385_vm9, %v1158_v7  ;;  %v5263_v45 = vpop.permute.xlu0 %1401 }
 0x134   :  { %6435 = vst [vmem:[#allocation46_spill] sm:$0xff] %v5263_v45 }
 0x135   :  { %2094 = vperm.xlu1 %4553, %v4929_v4   ;;  %2638 = vperm.xlu0 %4562, %v4890_v24  }
 0x136   :  { %v5261_v37 = vpop.permute.xlu1 %1252 }
 0x137   :  { %6434 = vst [vmem:[#allocation45_spill] sm:$0xff] %v5261_v37  ;;  %v5274_v10 = vpop.permute.xlu0 %1409 }
 0x138   :  { %6439 = vst [vmem:[#allocation49_spill] sm:$0xff] %v5274_v10 }
 0x139   :  { %2102 = vperm.xlu1 %4553, %v4938_v26   ;;  %2646 = vperm.xlu0 %4562, %v4899_v32  }
 0x13a   :  { %v5267_v35 = vpop.permute.xlu1 %1260 }
 0x13b   :  { %6436 = vst [vmem:[#allocation47_spill] sm:$0xff] %v5267_v35  ;;  %v5281_v35 = vpop.permute.xlu0 %1417 }
 0x13c   :  { %6441 = vst [vmem:[#allocation51_spill] sm:$0xff] %v5281_v35 }
 0x13d   :  { %4556 = vset.pattern.permute.xlu1 %v6437_v38  ;;  %4563 = vset.pattern.permute.xlu0 %v6364_v12 }
 0x13e   :  { %2215 = vperm.xlu1 %4556, %v4879_v15   ;;  %v5272_v7 = vpop.permute.xlu1 %1264  ;;  %2759 = vperm.xlu0 %4563, %v4909_v39  }
 0x13f   :  { %6438 = vst [vmem:[#allocation48_spill] sm:$0xff] %v5272_v7  ;;  %v5288_v12 = vpop.permute.xlu0 %1530  ;;  %v3089_v7 = vrot.slane %v3080_v25, %v4701_v8  ;;  %v6456_v25 = vld [vmem:[#allocation9_spill] sm:$0xff] }
 0x142   :  { %2219 = vperm.xlu1 %4556, %v4982_v9   ;;  %v5278_v31 = vpop.permute.xlu1 %1272  ;;  %2771 = vperm.xlu0 %4563, %v4919_v18  }
 0x143   :  { %6440 = vst [vmem:[#allocation50_spill] sm:$0xff] %v5278_v31  ;;  %v5294_v10 = vpop.permute.xlu0 %1542  ;;  %v6367_v31 = vmov 20  }
 0x144   :  { %6444 = vst [vmem:[#allocation53_spill] sm:$0xff] %v5294_v10 }
 0x146   :  { %2227 = vperm.xlu1 %4556, %v4890_v24   ;;  %v5284_v38 = vpop.permute.xlu1 %1280  ;;  %2779 = vperm.xlu0 %4563, %v4929_v4  }
 0x147   :  { %6442 = vst [vmem:[#allocation52_spill] sm:$0xff] %v5284_v38  ;;  %v5305_v45 = vpop.permute.xlu0 %1550 }
 0x148   :  { %6446 = vst [vmem:[#allocation55_spill] sm:$0xff] %v5305_v45  ;;  %v3096_v45 = vrot.slane %v3082_v27, %v4701_v8 }
 0x14a   :  { %2235 = vperm.xlu1 %4556, %v4899_v32   ;;  %2787 = vperm.xlu0 %4563, %v4938_v26   ;;  %v3112_v30 = vrot.slane %v3096_v45, %v4701_v8 }
 0x14b   :  { %v5291_v16 = vpop.permute.xlu1 %1393 }
 0x14c   :  { %v5350_v27 = vrot.slane %v3112_v30, %v6456_v25 }
 0x14e   :  { %4557 = vset.pattern.permute.xlu1 %v6443_v3  ;;  %4566 = vset.pattern.permute.xlu0 %v6367_v31  ;;  %v5311_v31 = vpop.permute.xlu0 %1663 }
 0x14f   :  { %2348 = vperm.xlu1 %4557, %v4909_v39   ;;  %v5298_v35 = vpop.permute.xlu1 %1397  ;;  %2900 = vperm.xlu0 %4566, %v4879_v15   ;;  %6448 = vst [vmem:[#allocation57_spill] sm:$0xff] %v5311_v31  ;;  %v3097_v31 = vcombine.high %v3089_v7, %v3089_v7 }
 0x150   :  { %6445 = vst [vmem:[#allocation54_spill] sm:$0xff] %v5298_v35  ;;  %v6373_v35 = vmov 21  }
 0x152   :  { %v5319_v62 = vpop.permute.xlu0 %1675 }
 0x153   :  { %2356 = vperm.xlu1 %4557, %v4982_v9   ;;  %v5302_v38 = vpop.permute.xlu1 %1405  ;;  %2912 = vperm.xlu0 %4566, %v4890_v24   ;;  %6450 = vst [vmem:[#allocation59_spill] sm:$0xff] %v5319_v62  ;;  %v3119_v62 = vrot.slane %v3097_v31, %v4701_v8  ;;  %v6377_v31 = vmov 22  }
 0x155   :  { %v3129_v10 = vcombine.high %v3119_v62, %v3119_v62 }
 0x157   :  { %2360 = vperm.xlu1 %4557, %v4919_v18   ;;  %v5308_v3 = vpop.permute.xlu1 %1413  ;;  %2920 = vperm.xlu0 %4566, %v4899_v32  }
 0x158   :  { %6447 = vst [vmem:[#allocation56_spill] sm:$0xff] %v5308_v3 }
 0x15b   :  { %2368 = vperm.xlu1 %4557, %v4929_v4   ;;  %4567 = vset.pattern.permute.xlu0 %v6373_v35 }
 0x15c   :  { %v5315_v56 = vpop.permute.xlu1 %1526  ;;  %3033 = vperm.xlu0 %4567, %v4909_v39  }
 0x15d   :  { %6449 = vst [vmem:[#allocation58_spill] sm:$0xff] %v5315_v56  ;;  %v5329_v56 = vpop.permute.xlu0 %1683 }
 0x15e   :  { %6454 = vst [vmem:[#allocation62_spill] sm:$0xff] %v5329_v56 }
 0x15f   :  { %2376 = vperm.xlu1 %4557, %v4938_v26  }
 0x160   :  { %v5322_v23 = vpop.permute.xlu1 %1534  ;;  %3045 = vperm.xlu0 %4567, %v4919_v18  }
 0x161   :  { %6451 = vst [vmem:[#allocation60_spill] sm:$0xff] %v5322_v23 }
 0x163   :  { %4560 = vset.pattern.permute.xlu1 %v6452_v17  ;;  %v5339_v17 = vrot.slane %v3119_v62, %v6456_v25 }
 0x164   :  { %2489 = vperm.xlu1 %4560, %v4879_v15   ;;  %v5327_v35 = vpop.permute.xlu1 %1538  ;;  %3053 = vperm.xlu0 %4567, %v4929_v4  }
 0x165   :  { %6453 = vst [vmem:[#allocation61_spill] sm:$0xff] %v5327_v35  ;;  %v5342_v35 = vpop.permute.xlu0 %1691 }
 0x166   :  { %6457 = vst [vmem:[#allocation9_spill] sm:$0xff] %v5342_v35 }
 0x168   :  { %2493 = vperm.xlu1 %4560, %v4982_v9   ;;  %v5335_v23 = vpop.permute.xlu1 %1546  ;;  %3061 = vperm.xlu0 %4567, %v4938_v26  }
 0x169   :  { %6455 = vst [vmem:[#allocation63_spill] sm:$0xff] %v5335_v23  ;;  %v3128_v23 = vcombine.high %v3112_v30, %v3112_v30  ;;  %v5353_v34 = vpop.permute.xlu0 %1804 }
 0x16b   :  { %v5359_v35 = vrot.slane %v3128_v23, %v6456_v25  ;;  %v3098_v23 = vcombine.high %v3096_v45, %v3096_v45 }
 0x16c   :  { %2501 = vperm.xlu1 %4560, %v4890_v24   ;;  %v5345_v56 = vpop.permute.xlu1 %1554  ;;  %4570 = vset.pattern.permute.xlu0 %v6377_v31  ;;  %v6459_v31 = vmov 18  }
 0x16d   :  { %6458 = vst [vmem:[#allocation64_spill] sm:$0xff] %v5345_v56  ;;  %3174 = vperm.xlu0 %4570, %v5339_v17   ;;  %v5362_v56 = vrot.slane %v3089_v7, %v4701_v8  ;;  %v5365_v37 = vpop.permute.xlu0 %1816 }
 0x16e   :  { %6460 = vst [vmem:[#allocation65_spill] sm:$0xff] %v5365_v37  ;;  %v3126_v37 = vrot.slane %v3098_v23, %v4701_v8 }
 0x16f   :  { %v5373_v3 = vrot.slane %v5362_v56, %v6456_v25 }
 0x170   :  { %2509 = vperm.xlu1 %4560, %v4899_v32   ;;  %v5391_v45 = vrot.slane %v3126_v37, %v6456_v25 }
 0x171   :  { %v5355_v19 = vpop.permute.xlu1 %1667  ;;  %3186 = vperm.xlu0 %4570, %v5350_v27  }
 0x174   :  { %4561 = vset.pattern.permute.xlu1 %v6459_v31  ;;  %v5379_v31 = vpop.permute.xlu0 %1824 }
 0x175   :  { %2622 = vperm.xlu1 %4561, %v4909_v39   ;;  %v5368_v30 = vpop.permute.xlu1 %1671  ;;  %3194 = vperm.xlu0 %4570, %v5359_v35   ;;  %6463 = vst [vmem:[#allocation68_spill] sm:$0xff] %v5379_v31  ;;  %v6466_v31 = vld [vmem:[#allocation8_spill] sm:$0xff] }
 0x176   :  { %6461 = vst [vmem:[#allocation66_spill] sm:$0xff] %v5368_v30  ;;  %v5383_v30 = vrot.slane %v3129_v10, %v6456_v25  ;;  %vm34_vm10 = vcmp.gt.s32.totalorder %v6466_v31, 0 }
 0x179   :  { %2630 = vperm.xlu1 %4561, %v4982_v9   ;;  %v5376_v7 = vpop.permute.xlu1 %1679  ;;  %4571 = vset.pattern.permute.xlu0 %v6378_v11  ;;  %v5393_v11 = vpop.permute.xlu0 %1937 }
 0x17a   :  { %6462 = vst [vmem:[#allocation67_spill] sm:$0xff] %v5376_v7  ;;  %3307 = vperm.xlu0 %4571, %v5373_v3   ;;  %v3130_v7 = vcombine.high %v3126_v37, %v3126_v37  ;;  %6465 = vst [vmem:[#allocation70_spill] sm:$0xff] %v5393_v11  ;;  %v6470_v11 = vmov 19  }
 0x17c   :  { %v5401_v8 = vrot.slane %v3130_v7, %v6456_v25 }
 0x17d   :  { %2634 = vperm.xlu1 %4561, %v4919_v18   ;;  %v5387_v62 = vpop.permute.xlu1 %1687  ;;  %v5403_v23 = vpop.permute.xlu0 %1949 }
 0x17e   :  { %6464 = vst [vmem:[#allocation69_spill] sm:$0xff] %v5387_v62  ;;  %3319 = vperm.xlu0 %4571, %v5383_v30   ;;  %6468 = vst [vmem:[#allocation71_spill] sm:$0xff] %v5403_v23  ;;  %v5406_v62 = vsel %vm34_vm10, %v6466_v31, 0  ;;  %v6381_v23 = vmov 24  }
 0x17f   :  { %vm40_vm11 = vcmp.gt.s32.totalorder %v5406_v62, 1  ;;  %vm37_vm13 = vcmp.lt.s32.totalorder %v5406_v62, 16 }
 0x180   :  { %v41_v31 = vsel %vm40_vm11, %v5406_v62, 1 }
 0x181   :  { %2642 = vperm.xlu1 %4561, %v4929_v4   ;;  %v5417_v7 = vpop.permute.xlu0 %1957 }
 0x182   :  { %v5397_v10 = vpop.permute.xlu1 %1800  ;;  %3327 = vperm.xlu0 %4571, %v5391_v45   ;;  %6472 = vst [vmem:[#allocation74_spill] sm:$0xff] %v5417_v7 }
 0x183   :  { %6467 = vst [vmem:[#allocation8_spill] sm:$0xff] %v5397_v10 }
 0x185   :  { %2650 = vperm.xlu1 %4561, %v4938_v26  }
 0x186   :  { %v5409_v37 = vpop.permute.xlu1 %1808  ;;  %3335 = vperm.xlu0 %4571, %v5401_v8  }
 0x187   :  { %6469 = vst [vmem:[#allocation72_spill] sm:$0xff] %v5409_v37  ;;  %v43_v37 = vcvt.s32.f32 %v41_v31 }
 0x189   :  { %4564 = vset.pattern.permute.xlu1 %v6470_v11  ;;  %v5426_v11 = vpop.permute.xlu0 %1965  ;;  %v46_v57 = vmul.f32 0.0625, %v43_v37 }
 0x18a   :  { %2763 = vperm.xlu1 %4564, %v4879_v15   ;;  %v5415_v10 = vpop.permute.xlu1 %1812  ;;  %4574 = vset.pattern.permute.xlu0 %v6381_v23  ;;  %6474 = vst [vmem:[#allocation76_spill] sm:$0xff] %v5426_v11  ;;  %v6477_v11 = vmov 20  }
 0x18b   :  { %6471 = vst [vmem:[#allocation73_spill] sm:$0xff] %v5415_v10  ;;  %3448 = vperm.xlu0 %4574, %v5339_v17   ;;  %4592 = vlog2.f32 %v46_v57  ;;  %v6382_v10 = vmov 25  }
 0x18d   :  { %v5433_v23 = vpop.permute.xlu0 %2078 }
 0x18e   :  { %2767 = vperm.xlu1 %4564, %v4982_v9   ;;  %v5423_v13 = vpop.permute.xlu1 %1820  ;;  %6476 = vst [vmem:[#allocation78_spill] sm:$0xff] %v5433_v23 }
 0x18f   :  { %6473 = vst [vmem:[#allocation75_spill] sm:$0xff] %v5423_v13  ;;  %3460 = vperm.xlu0 %4574, %v5350_v27  }
 0x191   :  { %v5440_v37 = vpop.permute.xlu0 %2090 }
 0x192   :  { %2775 = vperm.xlu1 %4564, %v4890_v24   ;;  %v5429_v7 = vpop.permute.xlu1 %1828  ;;  %6478 = vst [vmem:[#allocation79_spill] sm:$0xff] %v5440_v37 }
 0x193   :  { %6475 = vst [vmem:[#allocation77_spill] sm:$0xff] %v5429_v7  ;;  %3468 = vperm.xlu0 %4574, %v5359_v35  }
 0x195   :  { %v4593_v13 = vpop.eup %4592  ;;  %v5449_v23 = vpop.permute.xlu0 %2098 }
 0x196   :  { %2783 = vperm.xlu1 %4564, %v4899_v32   ;;  %6481 = vst [vmem:[#allocation82_spill] sm:$0xff] %v5449_v23 }
 0x197   :  { %v5435_v31 = vpop.permute.xlu1 %1941  ;;  %4575 = vset.pattern.permute.xlu0 %v6382_v10  ;;  %v50_v10 = vmul.f32 0.6931472, %v4593_v13 }
 0x198   :  { %3581 = vperm.xlu0 %4575, %v5373_v3  }
 0x19a   :  { %4565 = vset.pattern.permute.xlu1 %v6477_v11 }
 0x19b   :  { %2896 = vperm.xlu1 %4565, %v4909_v39   ;;  %v5443_v7 = vpop.permute.xlu1 %1945  ;;  %v5456_v39 = vpop.permute.xlu0 %2211 }
 0x19c   :  { %6479 = vst [vmem:[#allocation80_spill] sm:$0xff] %v5443_v7  ;;  %3593 = vperm.xlu0 %4575, %v5383_v30   ;;  %6482 = vst [vmem:[#allocation83_spill] sm:$0xff] %v5456_v39  ;;  %v53_v7 = vmul.f32 0.48089835, %v50_v10  ;;  %v6485_v10 = vmov 21  }
 0x19e   :  { %v55_v13 = vmul.f32 16.0, %v53_v7 }
 0x19f   :  { %2904 = vperm.xlu1 %4565, %v4982_v9   ;;  %v5447_v57 = vpop.permute.xlu1 %1953  ;;  %v5463_v23 = vpop.permute.xlu0 %2223 }
 0x1a0   :  { %6480 = vst [vmem:[#allocation81_spill] sm:$0xff] %v5447_v57  ;;  %3601 = vperm.xlu0 %4575, %v5391_v45   ;;  %v6383_v57 = vmov 26   ;;  %v4484_v39 = vtrunc.f32 %v55_v13 }
 0x1a3   :  { %2908 = vperm.xlu1 %4565, %v4919_v18   ;;  %v5453_v11 = vpop.permute.xlu1 %1961 }
 0x1a4   :  { %3609 = vperm.xlu0 %4575, %v5401_v8  }
 0x1a7   :  { %2916 = vperm.xlu1 %4565, %v4929_v4  }
 0x1a8   :  { %v5459_v37 = vpop.permute.xlu1 %2074  ;;  %4578 = vset.pattern.permute.xlu0 %v6383_v57  ;;  %v4485_v57 = vcvt.f32.s32 %v4484_v39 }
 0x1a9   :  { %6483 = vst [vmem:[#allocation84_spill] sm:$0xff] %v5459_v37  ;;  %3722 = vperm.xlu0 %4578, %v5339_v17   ;;  %v5473_v37 = vpop.permute.xlu0 %2231 }
 0x1aa   :  { %v59_v13 = vadd.s32 16, %v4485_v57 }
 0x1ab   :  { %2924 = vperm.xlu1 %4565, %v4938_v26   ;;  %v6384_v26 = vmov 27  }
 0x1ac   :  { %v5466_v18 = vpop.permute.xlu1 %2082  ;;  %vm62_vm12 = vcmp.lt.s32.totalorder %v59_v13, 31 }
 0x1ad   :  { %6484 = vst [vmem:[#allocation85_spill] sm:$0xff] %v5466_v18  ;;  %3734 = vperm.xlu0 %4578, %v5350_v27   ;;  %v5480_v18 = vpop.permute.xlu0 %2239 }
 0x1ae   :  { %6486 = vst [vmem:[#allocation86_spill] sm:$0xff] %v5480_v18 }
 0x1af   :  { %4568 = vset.pattern.permute.xlu1 %v6485_v10  ;;  %v3127_v10 = vcombine.high %v5362_v56, %v5362_v56 }
 0x1b0   :  { %3037 = vperm.xlu1 %4568, %v4879_v15   ;;  %v5471_v4 = vpop.permute.xlu1 %2086 }
 0x1b1   :  { %3742 = vperm.xlu0 %4578, %v5359_v35  }
 0x1b4   :  { %3041 = vperm.xlu1 %4568, %v4982_v9   ;;  %v5477_v7 = vpop.permute.xlu1 %2094  ;;  %v5488_v9 = vpop.permute.xlu0 %2352 }
 0x1b5   :  { %4579 = vset.pattern.permute.xlu0 %v6384_v26  ;;  %v63_v26 = vsel %vm62_vm12, %v59_v13, 31 }
 0x1b6   :  { %3855 = vperm.xlu0 %4579, %v5373_v3   ;;  %v5500_v18 = vsel %vm37_vm13, %v5406_v62, %v63_v26 }
 0x1b7   :  { %vm6387_vm14 = vcmp.eq.s32.totalorder %v5500_v18, 0  ;;  %vm6386_vm15 = vcmp.eq.s32.totalorder %v5500_v18, 1  ;;  %vm6388_vm0 = vcmp.eq.s32.totalorder %v5500_v18, 2  ;;  %vm666_vm1 = vcmp.eq.s32.totalorder %v5500_v18, 4 }
 0x1b8   :  { %3049 = vperm.xlu1 %4568, %v4890_v24   ;;  %v5484_v15 = vpop.permute.xlu1 %2102  ;;  %v6488_v24 = vmov 22   ;;  %v5497_v57 = vpop.permute.xlu0 %2364  ;;  %v190_v56 = vsel %vm6387_vm14, %v4805_v44, 0.0  ;;  %vm529_vm2 = vcmp.eq.s32.totalorder %v5500_v18, 3  ;;  %vm803_vm3 = vcmp.eq.s32.totalorder %v5500_v18, 5 }
 0x1b9   :  { %6487 = vst [vmem:[#allocation87_spill] sm:$0xff] %v5484_v15  ;;  %v5506_v15 = vrot.slane %v3127_v10, %v6456_v25  ;;  %v4672_v25 = vmov 28   ;;  %v327_v13 = vsel %vm6386_vm15, %v4820_v50, %v190_v56  ;;  %v196_v50 = vsel %vm6387_vm14, %v4811_v46, 0.0 }
 0x1ba   :  { %3867 = vperm.xlu0 %4579, %v5383_v30   ;;  %v464_v44 = vsel %vm6388_vm0, %v4847_v60, %v327_v13  ;;  %vm940_vm4 = vcmp.eq.s32.totalorder %v5500_v18, 6  ;;  %v333_v46 = vsel %vm6386_vm15, %v4841_v58, %v196_v50  ;;  %vm1077_vm5 = vcmp.eq.s32.totalorder %v5500_v18, 7 }
 0x1bb   :  { %vm6389_vm6 = vcmp.eq.s32.totalorder %v5500_v18, 8  ;;  %vm1351_vm7 = vcmp.eq.s32.totalorder %v5500_v18, 9  ;;  %vm1488_vm8 = vcmp.eq.s32.totalorder %v5500_v18, 10  ;;  %vm1625_vm10 = vcmp.eq.s32.totalorder %v5500_v18, 11 }
 0x1bc   :  { %3057 = vperm.xlu1 %4568, %v4899_v32   ;;  %v5518_v26 = vpop.permute.xlu0 %2372  ;;  %vm1762_vm11 = vcmp.eq.s32.totalorder %v5500_v18, 12  ;;  %vm1899_vm12 = vcmp.eq.s32.totalorder %v5500_v18, 13  ;;  %vm2036_vm13 = vcmp.eq.s32.totalorder %v5500_v18, 14  ;;  %vm6394_vm9 = vcmp.eq.s32.totalorder %v5500_v18, 15 }
 0x1bd   :  { %v5490_v39 = vpop.permute.xlu1 %2215 }
 0x1be   :  { %3875 = vperm.xlu0 %4579, %v5391_v45  }
 0x1c0   :  { %4569 = vset.pattern.permute.xlu1 %v6488_v24  ;;  %v601_v24 = vsel %vm529_vm2, %v4895_v29, %v464_v44  ;;  %v5548_v13 = vpop.permute.xlu0 %2485 }
 0x1c1   :  { %3170 = vperm.xlu1 %4569, %v5373_v3   ;;  %v5503_v32 = vpop.permute.xlu1 %2219  ;;  %v738_v56 = vsel %vm666_vm1, %v4905_v36, %v601_v24  ;;  %v6489_v36 = vld [vmem:[#allocation10_spill] sm:$0xff]  ;;  %v470_v24 = vsel %vm6388_vm0, %v4851_v61, %v333_v46  ;;  %v6490_v61 = vld [vmem:[#allocation13_spill] sm:$0xff] }
 0x1c2   :  { %3883 = vperm.xlu0 %4579, %v5401_v8   ;;  %v875_v60 = vsel %vm803_vm3, %v4968_v5, %v738_v56  ;;  %v188_v44 = vsel %vm6387_vm14, %v6489_v36, 0.0  ;;  %v200_v5 = vsel %vm6387_vm14, %v4817_v49, 0.0  ;;  %v607_v50 = vsel %vm529_vm2, %v4912_v40, %v470_v24 }
 0x1c3   :  { %v1012_v58 = vsel %vm940_vm4, %v4966_v0, %v875_v60  ;;  %v325_v0 = vsel %vm6386_vm15, %v6490_v61, %v188_v44  ;;  %v337_v60 = vsel %vm6386_vm15, %v4845_v59, %v200_v5  ;;  %v744_v40 = vsel %vm666_vm1, %v4914_v41, %v607_v50  ;;  %v6494_v50 = vld [vmem:[#allocation18_spill] sm:$0xff] }
 0x1c4   :  { %v1149_v56 = vsel %vm1077_vm5, %v5179_v52, %v1012_v58  ;;  %v5577_v49 = vpop.permute.xlu0 %2497  ;;  %v474_v52 = vsel %vm6388_vm0, %v4859_v2, %v337_v60  ;;  %v4673_v44 = vmov 29   ;;  %v881_v2 = vsel %vm803_vm3, %v4991_v21, %v744_v40  ;;  %v6493_v58 = vld [vmem:[#allocation12_spill] sm:$0xff] }
 0x1c5   :  { %3178 = vperm.xlu1 %4569, %v5506_v15   ;;  %v5515_v62 = vpop.permute.xlu1 %2227  ;;  %v1286_v36 = vsel %vm6389_vm6, %v5164_v51, %v1149_v56  ;;  %v611_v59 = vsel %vm529_vm2, %v4923_v63, %v474_v52  ;;  %v6491_v51 = vld [vmem:[#allocation16_spill] sm:$0xff]  ;;  %v6492_v24 = vmov 23   ;;  %v194_v63 = vsel %vm6387_vm14, %v6493_v58, 0.0 }
 0x1c6   :  { %4582 = vset.pattern.permute.xlu0 %v4672_v25  ;;  %v1423_v41 = vsel %vm1351_vm7, %v5291_v16, %v1286_v36  ;;  %v462_v5 = vsel %vm6388_vm0, %v6491_v51, %v325_v0  ;;  %v748_v61 = vsel %vm666_vm1, %v4925_v1, %v611_v59  ;;  %v6495_v0 = vld [vmem:[#allocation24_spill] sm:$0xff]  ;;  %v1018_v52 = vsel %vm940_vm4, %v4975_v28, %v881_v2 }
 0x1c7   :  { %3996 = vperm.xlu0 %4582, %v5339_v17   ;;  %v599_v21 = vsel %vm529_vm2, %v6494_v50, %v462_v5  ;;  %v1560_v40 = vsel %vm1488_vm8, %v5288_v12, %v1423_v41  ;;  %v885_v36 = vsel %vm803_vm3, %v5005_v42, %v748_v61  ;;  %v1155_v1 = vsel %vm1077_vm5, %v5234_v43, %v1018_v52  ;;  %v6496_v12 = vld [vmem:[#allocation25_spill] sm:$0xff]  ;;  %v6500_v50 = vld [vmem:[#allocation34_spill] sm:$0xff] }
 0x1c8   :  { %v5624_v56 = vpop.permute.xlu0 %2505  ;;  %v736_v60 = vsel %vm666_vm1, %v6495_v0, %v599_v21  ;;  %v1697_v59 = vsel %vm1625_vm10, %v5355_v19, %v1560_v40  ;;  %v331_v28 = vsel %vm6386_vm15, %v4829_v53, %v194_v63  ;;  %v198_v42 = vsel %vm6387_vm14, %v4813_v48, 0.0  ;;  %v6499_v63 = vld [vmem:[#allocation28_spill] sm:$0xff]  ;;  %v6502_v0 = vld [vmem:[#allocation53_spill] sm:$0xff]  ;;  %v6503_v52 = vld [vmem:[#allocation78_spill] sm:$0xff] }
 0x1c9   :  { %3182 = vperm.xlu1 %4569, %v5383_v30   ;;  %v5531_v10 = vpop.permute.xlu1 %2235  ;;  %v468_v43 = vsel %vm6388_vm0, %v4865_v6, %v331_v28  ;;  %v873_v19 = vsel %vm803_vm3, %v6496_v12, %v736_v60  ;;  %v1022_v53 = vsel %vm940_vm4, %v4996_v22, %v885_v36  ;;  %v1292_v6 = vsel %vm6389_vm6, %v5201_v47, %v1155_v1  ;;  %v6504_v36 = vld [vmem:[#allocation56_spill] sm:$0xff] }
 0x1ca   :  { %v1010_v48 = vsel %vm940_vm4, %v5024_v33, %v873_v19  ;;  %v1834_v41 = vsel %vm1762_vm11, %v5353_v34, %v1697_v59  ;;  %v1159_v51 = vsel %vm1077_vm5, %v5250_v20, %v1022_v53  ;;  %v1429_v22 = vsel %vm1351_vm7, %v5302_v38, %v1292_v6  ;;  %v6497_v38 = vld [vmem:[#allocation15_spill] sm:$0xff] }
 0x1cb   :  { %4008 = vperm.xlu0 %4582, %v5350_v27   ;;  %v1971_v33 = vsel %vm1899_vm12, %v5435_v31, %v1834_v41  ;;  %v202_v34 = vsel %vm6387_vm14, %v4832_v54, 0.0  ;;  %v335_v47 = vsel %vm6386_vm15, %v4834_v55, %v198_v42  ;;  %v605_v20 = vsel %vm529_vm2, %v4875_v14, %v468_v43  ;;  %v6501_v14 = vld [vmem:[#allocation43_spill] sm:$0xff]  ;;  %v6506_v43 = vld [vmem:[#allocation21_spill] sm:$0xff]  ;;  %v6509_v41 = vld [vmem:[#allocation20_spill] sm:$0xff] }
 0x1cc   :  { %v5687_v5 = vpop.permute.xlu0 %2513  ;;  %v339_v31 = vsel %vm6386_vm15, %v6497_v38, %v202_v34  ;;  %v742_v54 = vsel %vm666_vm1, %v6499_v63, %v605_v20  ;;  %v1147_v55 = vsel %vm1077_vm5, %v6500_v50, %v1010_v48  ;;  %v1296_v61 = vsel %vm6389_vm6, %v6501_v14, %v1159_v51  ;;  %v6505_v59 = vld [vmem:[#allocation67_spill] sm:$0xff]  ;;  %v6508_v48 = vld [vmem:[#allocation45_spill] sm:$0xff]  ;;  %v6510_v51 = vld [vmem:[#allocation30_spill] sm:$0xff] }
 0x1cd   :  { %3190 = vperm.xlu1 %4569, %v5391_v45   ;;  %v1566_v60 = vsel %vm1488_vm8, %v6502_v0, %v1429_v22  ;;  %v2108_v40 = vsel %vm2036_vm13, %v6503_v52, %v1971_v33  ;;  %v1433_v1 = vsel %vm1351_vm7, %v6504_v36, %v1296_v61  ;;  %vm6390_vm15 = vcmp.eq.s32.totalorder %v5500_v18, 16  ;;  %v6507_v19 = vld [vmem:[#allocation27_spill] sm:$0xff]  ;;  %v6511_v33 = vld [vmem:[#allocation37_spill] sm:$0xff]  ;;  %v6518_v36 = vld [vmem:[#allocation58_spill] sm:$0xff] }
 0x1ce   :  { %v5555_v29 = vpop.permute.xlu1 %2348  ;;  %v1703_v28 = vsel %vm1625_vm10, %v6505_v59, %v1566_v60  ;;  %v2245_v42 = vsel %vm6394_vm9, %v5490_v39, %v2108_v40  ;;  %v879_v53 = vsel %vm803_vm3, %v6507_v19, %v742_v54  ;;  %v1284_v6 = vsel %vm6389_vm6, %v6508_v48, %v1147_v55  ;;  %v6512_v20 = vld [vmem:[#allocation55_spill] sm:$0xff]  ;;  %v6514_v54 = vld [vmem:[#allocation44_spill] sm:$0xff]  ;;  %v6515_v55 = vld [vmem:[#allocation69_spill] sm:$0xff] }
 0x1cf   :  { %4016 = vperm.xlu0 %4582, %v5359_v35   ;;  %v476_v39 = vsel %vm6388_vm0, %v6509_v41, %v339_v31  ;;  %v1016_v34 = vsel %vm940_vm4, %v6511_v33, %v879_v53  ;;  %vm6391_vm14 = vcmp.eq.s32.totalorder %v5500_v18, 18  ;;  %v1570_v38 = vsel %vm1488_vm8, %v6512_v20, %v1433_v1  ;;  %v6516_v61 = vld [vmem:[#allocation81_spill] sm:$0xff]  ;;  %v6522_v48 = vld [vmem:[#allocation35_spill] sm:$0xff] }
 0x1d0   :  { %v1421_v50 = vsel %vm1351_vm7, %v6514_v54, %v1284_v6  ;;  %v1707_v14 = vsel %vm1625_vm10, %v6515_v55, %v1570_v38  ;;  %v4674_v52 = vmov 30   ;;  %v6521_v19 = vmov 24   ;;  %v6523_v41 = vld [vmem:[#allocation39_spill] sm:$0xff]  ;;  %v6526_v38 = vld [vmem:[#allocation48_spill] sm:$0xff] }
 0x1d1   :  { %3198 = vperm.xlu1 %4569, %v5401_v8   ;;  %v1558_v1 = vsel %vm1488_vm8, %v6518_v36, %v1421_v50  ;;  %v1153_v6 = vsel %vm1077_vm5, %v6522_v48, %v1016_v34  ;;  %v6528_v54 = vld [vmem:[#allocation8_spill] sm:$0xff]  ;;  %v6529_v55 = vld [vmem:[#allocation31_spill] sm:$0xff] }
 0x1d2   :  { %v5586_v46 = vpop.permute.xlu1 %2356  ;;  %v1290_v34 = vsel %vm6389_vm6, %v6526_v38, %v1153_v6  ;;  %v6539_v38 = vld [vmem:[#allocation49_spill] sm:$0xff] }
 0x1d3   :  { %4583 = vset.pattern.permute.xlu0 %v4673_v44 }
 0x1d4   :  { %4129 = vperm.xlu0 %4583, %v5373_v3  }
 0x1d5   :  { %4572 = vset.pattern.permute.xlu1 %v6492_v24  ;;  %v6498_v24 = vld [vmem:[#allocation19_spill] sm:$0xff] }
 0x1d6   :  { %3311 = vperm.xlu1 %4572, %v5339_v17   ;;  %v5622_v16 = vpop.permute.xlu1 %2360  ;;  %v472_v58 = vsel %vm6388_vm0, %v6498_v24, %v335_v47  ;;  %v2627_v47 = vpop.permute.xlu0 %2626  ;;  %v6513_v24 = vld [vmem:[#allocation65_spill] sm:$0xff]  ;;  %vm6393_vm0 = vcmp.eq.s32.totalorder %v5500_v18, 17 }
 0x1d7   :  { %v609_v12 = vsel %vm529_vm2, %v6506_v43, %v472_v58  ;;  %v1840_v31 = vsel %vm1762_vm11, %v6513_v24, %v1703_v28  ;;  %v2382_v58 = vsel %vm6390_vm15, %v5488_v9, %v2245_v42  ;;  %v6517_v9 = vld [vmem:[#allocation22_spill] sm:$0xff]  ;;  %v6519_v28 = vld [vmem:[#allocation29_spill] sm:$0xff]  ;;  %v6520_v43 = vld [vmem:[#allocation32_spill] sm:$0xff] }
 0x1d8   :  { %4141 = vperm.xlu0 %4583, %v5383_v30   ;;  %v746_v22 = vsel %vm666_vm1, %v6510_v51, %v609_v12  ;;  %v1977_v0 = vsel %vm1899_vm12, %v6516_v61, %v1840_v31  ;;  %v613_v40 = vsel %vm529_vm2, %v6517_v9, %v476_v39  ;;  %v6524_v51 = vld [vmem:[#allocation68_spill] sm:$0xff]  ;;  %v6527_v24 = vld [vmem:[#allocation57_spill] sm:$0xff]  ;;  %v6530_v61 = vld [vmem:[#allocation38_spill] sm:$0xff] }
 0x1d9   :  { %v883_v42 = vsel %vm803_vm3, %v6519_v28, %v746_v22  ;;  %v750_v12 = vsel %vm666_vm1, %v6520_v43, %v613_v40  ;;  %v1844_v33 = vsel %vm1762_vm11, %v6524_v51, %v1707_v14  ;;  %v6525_v22 = vld [vmem:[#allocation79_spill] sm:$0xff]  ;;  %v1695_v31 = vsel %vm1625_vm10, %v6527_v24, %v1558_v1  ;;  %v6532_v9 = vld [vmem:[#allocation46_spill] sm:$0xff]  ;;  %v6537_v51 = vld [vmem:[#allocation84_spill] sm:$0xff] }
 0x1da   :  { %3315 = vperm.xlu1 %4572, %v5506_v15   ;;  %v5663_v2 = vpop.permute.xlu1 %2368  ;;  %v2639_v53 = vpop.permute.xlu0 %2638  ;;  %v1020_v39 = vsel %vm940_vm4, %v6523_v41, %v883_v42  ;;  %v1832_v50 = vsel %vm1762_vm11, %v6528_v54, %v1695_v31  ;;  %v887_v14 = vsel %vm803_vm3, %v6529_v55, %v750_v12  ;;  %v6533_v40 = vld [vmem:[#allocation82_spill] sm:$0xff] }
 0x1db   :  { %v6534_v42 = vld [vmem:[#allocation50_spill] sm:$0xff] }
 0x1dc   :  { %4149 = vperm.xlu0 %4583, %v5391_v45   ;;  %v6535_v12 = vld [vmem:[#allocation70_spill] sm:$0xff] }
 0x1de   :  { %3323 = vperm.xlu1 %4572, %v5350_v27   ;;  %v5712_v21 = vpop.permute.xlu1 %2376  ;;  %v2647_v41 = vpop.permute.xlu0 %2646 }
 0x1e0   :  { %4157 = vperm.xlu0 %4583, %v5401_v8  }
 0x1e2   :  { %3331 = vperm.xlu1 %4572, %v5359_v35  }
 0x1e3   :  { %v2490_v63 = vpop.permute.xlu1 %2489 }
 0x1e4   :  { %v2519_v60 = vsel %vm6393_vm0, %v2490_v63, %v2382_v58  ;;  %4586 = vset.pattern.permute.xlu0 %v4674_v52  ;;  %v1981_v58 = vsel %vm1899_vm12, %v5453_v11, %v1844_v33 }
 0x1e5   :  { %v5785_v59 = vsel %vm6391_vm14, %v2627_v47, %v2519_v60  ;;  %4270 = vperm.xlu0 %4586, %v5339_v17   ;;  %v2114_v47 = vsel %vm2036_vm13, %v6525_v22, %v1977_v0  ;;  %v1157_v0 = vsel %vm1077_vm5, %v6530_v61, %v1020_v39  ;;  %v6531_v60 = vld [vmem:[#allocation41_spill] sm:$0xff]  ;;  %v2118_v36 = vsel %vm2036_vm13, %v6533_v40, %v1981_v58  ;;  %v6540_v58 = vld [vmem:[#allocation52_spill] sm:$0xff]  ;;  %v6543_v61 = vld [vmem:[#allocation63_spill] sm:$0xff]  ;;  %v2760_v40 = vpop.permute.xlu0 %2759 }
 0x1e6   :  { %4573 = vset.pattern.permute.xlu1 %v6521_v19  ;;  %v2251_v63 = vsel %vm6394_vm9, %v5515_v62, %v2114_v47  ;;  %v1024_v11 = vsel %vm940_vm4, %v6531_v60, %v887_v14  ;;  %v1427_v62 = vsel %vm1351_vm7, %v6532_v9, %v1290_v34  ;;  %v1294_v43 = vsel %vm6389_vm6, %v6534_v42, %v1157_v0  ;;  %v6538_v47 = vld [vmem:[#allocation40_spill] sm:$0xff]  ;;  %v6544_v0 = vld [vmem:[#allocation73_spill] sm:$0xff]  ;;  %v6547_v42 = vld [vmem:[#allocation71_spill] sm:$0xff] }
 0x1e7   :  { %3444 = vperm.xlu1 %4573, %v5373_v3   ;;  %v5808_v20 = vpop.permute.xlu1 %2493  ;;  %v2388_v1 = vsel %vm6390_vm15, %v5497_v57, %v2251_v63  ;;  %v1969_v19 = vsel %vm1899_vm12, %v6535_v12, %v1832_v50  ;;  %v2255_v48 = vsel %vm6394_vm9, %v5531_v10, %v2118_v36  ;;  %v6536_v57 = vld [vmem:[#allocation61_spill] sm:$0xff]  ;;  %v1161_v10 = vsel %vm1077_vm5, %v6538_v47, %v1024_v11  ;;  %v6541_v63 = vld [vmem:[#allocation59_spill] sm:$0xff] }
 0x1e8   :  { %v1564_v39 = vsel %vm1488_vm8, %v6536_v57, %v1427_v62  ;;  %v2106_v33 = vsel %vm2036_vm13, %v6537_v51, %v1969_v19  ;;  %v1431_v34 = vsel %vm1351_vm7, %v6539_v38, %v1294_v43  ;;  %v2392_v24 = vsel %vm6390_vm15, %v5518_v26, %v2255_v48  ;;  %v6542_v50 = vld [vmem:[#allocation83_spill] sm:$0xff]  ;;  %v6548_v48 = vld [vmem:[#allocation64_spill] sm:$0xff]  ;;  %v6550_v47 = vld [vmem:[#allocation9_spill] sm:$0xff] }
 0x1e9   :  { %4282 = vperm.xlu0 %4586, %v5350_v27   ;;  %v1701_v54 = vsel %vm1625_vm10, %v6541_v63, %v1564_v39  ;;  %v2243_v55 = vsel %vm6394_vm9, %v6542_v50, %v2106_v33  ;;  %v1568_v26 = vsel %vm1488_vm8, %v6543_v61, %v1431_v34  ;;  %v4675_v62 = vmov 31   ;;  %v6545_v36 = vld [vmem:[#allocation51_spill] sm:$0xff]  ;;  %v6551_v38 = vld [vmem:[#allocation74_spill] sm:$0xff]  ;;  %v6554_v50 = vld [vmem:[#allocation76_spill] sm:$0xff] }
 0x1ea   :  { %v1838_v60 = vsel %vm1762_vm11, %v6544_v0, %v1701_v54  ;;  %v2380_v11 = vsel %vm6390_vm15, %v5555_v29, %v2243_v55  ;;  %v6553_v54 = vmov 25   ;;  %v6555_v61 = vld [vmem:[#allocation87_spill] sm:$0xff] }
 0x1eb   :  { %3452 = vperm.xlu1 %4573, %v5506_v15   ;;  %v2502_v28 = vpop.permute.xlu1 %2501  ;;  %v1975_v43 = vsel %vm1899_vm12, %v6547_v42, %v1838_v60  ;;  %v2517_v12 = vsel %vm6393_vm0, %v5548_v13, %v2380_v11  ;;  %v2772_v13 = vpop.permute.xlu0 %2771 }
 0x1ec   :  { %v2525_v6 = vsel %vm6393_vm0, %v2502_v28, %v2388_v1  ;;  %v6546_v28 = vld [vmem:[#allocation62_spill] sm:$0xff]  ;;  %v2112_v39 = vsel %vm2036_vm13, %v5471_v4, %v1975_v43 }
 0x1ed   :  { %v5864_v22 = vsel %vm6391_vm14, %v2639_v53, %v2525_v6  ;;  %4290 = vperm.xlu0 %4586, %v5359_v35   ;;  %v1298_v53 = vsel %vm6389_vm6, %v6540_v58, %v1161_v10  ;;  %vm6392_vm6 = vcmp.eq.s32.totalorder %v5500_v18, 19  ;;  %v1705_v29 = vsel %vm1625_vm10, %v6546_v28, %v1568_v26 }
 0x1ee   :  { %v1435_v1 = vsel %vm1351_vm7, %v6545_v36, %v1298_v53  ;;  %v2249_v4 = vsel %vm6394_vm9, %v5463_v23, %v2112_v39 }
 0x1ef   :  { %3456 = vperm.xlu1 %4573, %v5383_v30   ;;  %v2510_v31 = vpop.permute.xlu1 %2509  ;;  %v1572_v6 = vsel %vm1488_vm8, %v6548_v48, %v1435_v1  ;;  %v2386_v63 = vsel %vm6390_vm15, %v5622_v16, %v2249_v4  ;;  %v2780_v16 = vpop.permute.xlu0 %2779 }
 0x1f0   :  { %v2529_v14 = vsel %vm6393_vm0, %v2510_v31, %v2392_v24  ;;  %v1709_v10 = vsel %vm1625_vm10, %v6550_v47, %v1572_v6  ;;  %v6552_v31 = vld [vmem:[#allocation77_spill] sm:$0xff]  ;;  %v6557_v6 = vmov 26  }
 0x1f1   :  { %v5899_v9 = vsel %vm6391_vm14, %v2647_v41, %v2529_v14  ;;  %4587 = vset.pattern.permute.xlu0 %v4675_v62  ;;  %v6549_v41 = vld [vmem:[#allocation75_spill] sm:$0xff]  ;;  %v1846_v58 = vsel %vm1762_vm11, %v6552_v31, %v1709_v10 }
 0x1f2   :  { %4403 = vperm.xlu0 %4587, %v5373_v3   ;;  %v1842_v57 = vsel %vm1762_vm11, %v6549_v41, %v1705_v29  ;;  %v1983_v23 = vsel %vm1899_vm12, %v6554_v50, %v1846_v58 }
 0x1f3   :  { %3464 = vperm.xlu1 %4573, %v5391_v45   ;;  %v1979_v34 = vsel %vm1899_vm12, %v6551_v38, %v1842_v57  ;;  %v2120_v26 = vsel %vm2036_vm13, %v6555_v61, %v1983_v23  ;;  %v2788_v29 = vpop.permute.xlu0 %2787  ;;  %v6562_v23 = vld [vmem:[#allocation17_spill] sm:$0xff] }
 0x1f4   :  { %v2623_v19 = vpop.permute.xlu1 %2622  ;;  %v2116_v53 = vsel %vm2036_vm13, %v5477_v7, %v1979_v34  ;;  %v2523_v7 = vsel %vm6393_vm0, %v5577_v49, %v2386_v63  ;;  %v6556_v49 = vld [vmem:[#allocation86_spill] sm:$0xff] }
 0x1f5   :  { %v2654_v51 = vsel %vm6391_vm14, %v2623_v19, %v2517_v12  ;;  %v2253_v55 = vsel %vm6394_vm9, %v5473_v37, %v2116_v53  ;;  %v2257_v11 = vsel %vm6394_vm9, %v6556_v49, %v2120_v26  ;;  %v6558_v53 = vld [vmem:[#allocation11_spill] sm:$0xff]  ;;  %vm6563_vm9 = vcmp.eq.s32.totalorder %v5500_v18, 2  ;;  %v6566_v26 = vld [vmem:[#allocation26_spill] sm:$0xff]  ;;  %v6567_v49 = vld [vmem:[#allocation33_spill] sm:$0xff] }
 0x1f6   :  { %v2791_v33 = vsel %vm6392_vm6, %v2760_v40, %v2654_v51  ;;  %4415 = vperm.xlu0 %4587, %v5383_v30   ;;  %v2390_v0 = vsel %vm6390_vm15, %v5663_v2, %v2253_v55  ;;  %v2394_v2 = vsel %vm6390_vm15, %v5712_v21, %v2257_v11  ;;  %vm2858_vm15 = vcmp.eq.s32.totalorder %v5500_v18, 20 }
 0x1f7   :  { %3472 = vperm.xlu1 %4573, %v5401_v8   ;;  %v2527_v40 = vsel %vm6393_vm0, %v5624_v56, %v2390_v0  ;;  %v2531_v42 = vsel %vm6393_vm0, %v5687_v5, %v2394_v2  ;;  %v2901_v12 = vpop.permute.xlu0 %2900  ;;  %vm6561_vm0 = vcmp.eq.s32.totalorder %v5500_v18, 1  ;;  %v6564_v55 = vmov 27  }
 0x1f8   :  { %v5941_v24 = vpop.permute.xlu1 %2630 }
 0x1fa   :  { %4423 = vperm.xlu0 %4587, %v5391_v45  }
 0x1fb   :  { %4576 = vset.pattern.permute.xlu1 %v6553_v54  ;;  %v2913_v41 = vpop.permute.xlu0 %2912  ;;  %v6560_v54 = vld [vmem:[#allocation14_spill] sm:$0xff] }
 0x1fc   :  { %3585 = vperm.xlu1 %4576, %v5339_v17   ;;  %v2635_v14 = vpop.permute.xlu1 %2634 }
 0x1fd   :  { %v2660_v60 = vsel %vm6391_vm14, %v2635_v14, %v2523_v7  ;;  %v6565_v7 = vld [vmem:[#allocation23_spill] sm:$0xff] }
 0x1fe   :  { %v2797_v37 = vsel %vm6392_vm6, %v2772_v13, %v2660_v60  ;;  %4431 = vperm.xlu0 %4587, %v5401_v8  }
 0x1ff   :  { %v2921_v13 = vpop.permute.xlu0 %2920 }
 0x200   :  { %3589 = vperm.xlu1 %4576, %v5506_v15   ;;  %v2643_v36 = vpop.permute.xlu1 %2642 }
 0x201   :  { %v2664_v1 = vsel %vm6391_vm14, %v2643_v36, %v2527_v40  ;;  %v6568_v36 = vld [vmem:[#allocation36_spill] sm:$0xff] }
 0x202   :  { %v2801_v28 = vsel %vm6392_vm6, %v2780_v16, %v2664_v1  ;;  %v6569_v1 = vld [vmem:[#allocation42_spill] sm:$0xff] }
 0x203   :  { %v3034_v34 = vpop.permute.xlu0 %3033 }
 0x204   :  { %3597 = vperm.xlu1 %4576, %v5350_v27   ;;  %v2651_v56 = vpop.permute.xlu1 %2650 }
 0x205   :  { %v2668_v43 = vsel %vm6391_vm14, %v2651_v56, %v2531_v42  ;;  %vm2995_vm14 = vcmp.eq.s32.totalorder %v5500_v18, 21  ;;  %v6570_v56 = vld [vmem:[#allocation47_spill] sm:$0xff] }
 0x206   :  { %v2805_v21 = vsel %vm6392_vm6, %v2788_v29, %v2668_v43 }
 0x207   :  { %v3046_v58 = vpop.permute.xlu0 %3045 }
 0x208   :  { %3605 = vperm.xlu1 %4576, %v5359_v35  }
 0x209   :  { %v2764_v19 = vpop.permute.xlu1 %2763 }
 0x20a   :  { %v2793_v48 = vsel %vm6392_vm6, %v2764_v19, %v5785_v59 }
 0x20b   :  { %v2930_v5 = vsel %vm2858_vm15, %v2901_v12, %v2793_v48  ;;  %v3054_v61 = vpop.permute.xlu0 %3053  ;;  %v6572_v12 = vld [vmem:[#allocation54_spill] sm:$0xff] }
 0x20c   :  { %4577 = vset.pattern.permute.xlu1 %v6557_v6 }
 0x20d   :  { %3718 = vperm.xlu1 %4577, %v5373_v3   ;;  %v2768_v57 = vpop.permute.xlu1 %2767 }
 0x20f   :  { %v3062_v6 = vpop.permute.xlu0 %3061 }
 0x211   :  { %3726 = vperm.xlu1 %4577, %v5506_v15   ;;  %v2776_v39 = vpop.permute.xlu1 %2775 }
 0x212   :  { %v2799_v51 = vsel %vm6392_vm6, %v2776_v39, %v5864_v22 }
 0x213   :  { %v6012_v59 = vsel %vm2858_vm15, %v2913_v41, %v2799_v51  ;;  %v6573_v41 = vld [vmem:[#allocation60_spill] sm:$0xff]  ;;  %v6574_v51 = vld [vmem:[#allocation66_spill] sm:$0xff] }
 0x215   :  { %3730 = vperm.xlu1 %4577, %v5383_v30   ;;  %v2784_v47 = vpop.permute.xlu1 %2783 }
 0x216   :  { %v2803_v10 = vsel %vm6392_vm6, %v2784_v47, %v5899_v9  ;;  %vm6559_vm6 = vcmp.eq.s32.totalorder %v5500_v18, 0 }
 0x217   :  { %v6020_v38 = vsel %vm2858_vm15, %v2921_v13, %v2803_v10  ;;  %v192_v63 = vsel %vm6559_vm6, %v6558_v53, 0.0  ;;  %v6577_v53 = vld [vmem:[#allocation85_spill] sm:$0xff]  ;;  %vm3543_vm6 = vcmp.eq.s32.totalorder %v5500_v18, 25 }
 0x218   :  { %v329_v50 = vsel %vm6561_vm0, %v6560_v54, %v192_v63  ;;  %vm6578_vm0 = vcmp.eq.s32.totalorder %v5500_v18, 15 }
 0x219   :  { %3738 = vperm.xlu1 %4577, %v5391_v45  }
 0x21a   :  { %v2897_v22 = vpop.permute.xlu1 %2896 }
 0x21b   :  { %v2928_v4 = vsel %vm2858_vm15, %v2897_v22, %v2791_v33  ;;  %v466_v33 = vsel %vm6563_vm9, %v6562_v23, %v329_v50  ;;  %vm6571_vm9 = vcmp.eq.s32.totalorder %v5500_v18, 8  ;;  %v6576_v22 = vld [vmem:[#allocation80_spill] sm:$0xff] }
 0x21c   :  { %v6028_v31 = vsel %vm2995_vm14, %v3034_v34, %v2928_v4  ;;  %v603_v14 = vsel %vm529_vm2, %v6565_v7, %v466_v33  ;;  %vm6579_vm2 = vcmp.eq.s32.totalorder %v5500_v18, 16 }
 0x21d   :  { %3746 = vperm.xlu1 %4577, %v5401_v8   ;;  %v740_v0 = vsel %vm666_vm1, %v6566_v26, %v603_v14  ;;  %vm3132_vm1 = vcmp.eq.s32.totalorder %v5500_v18, 22 }
 0x21e   :  { %v2905_v9 = vpop.permute.xlu1 %2904  ;;  %v877_v11 = vsel %vm803_vm3, %v6567_v49, %v740_v0  ;;  %vm6580_vm3 = vcmp.eq.s32.totalorder %v5500_v18, 17 }
 0x21f   :  { %v1014_v2 = vsel %vm940_vm4, %v6568_v36, %v877_v11  ;;  %vm6581_vm4 = vcmp.eq.s32.totalorder %v5500_v18, 18 }
 0x220   :  { %v1151_v29 = vsel %vm1077_vm5, %v6569_v1, %v1014_v2  ;;  %vm6582_vm5 = vcmp.eq.s32.totalorder %v5500_v18, 19 }
 0x221   :  { %4580 = vset.pattern.permute.xlu1 %v6564_v55 }
 0x222   :  { %3859 = vperm.xlu1 %4580, %v5339_v17   ;;  %v2909_v16 = vpop.permute.xlu1 %2908 }
 0x223   :  { %v2934_v60 = vsel %vm2858_vm15, %v2909_v16, %v2797_v37  ;;  %v1288_v37 = vsel %vm6571_vm9, %v6570_v56, %v1151_v29  ;;  %vm6583_vm9 = vcmask 130048  }
 0x224   :  { %v3071_v40 = vsel %vm2995_vm14, %v3046_v58, %v2934_v60  ;;  %v1425_v19 = vsel %vm1351_vm7, %v6572_v12, %v1288_v37  ;;  %vm3680_vm7 = vcmp.eq.s32.totalorder %v5500_v18, 26 }
 0x225   :  { %v1562_v39 = vsel %vm1488_vm8, %v6573_v41, %v1425_v19  ;;  %vm3817_vm8 = vcmp.eq.s32.totalorder %v5500_v18, 27 }
 0x226   :  { %3863 = vperm.xlu1 %4580, %v5506_v15   ;;  %v2917_v42 = vpop.permute.xlu1 %2916  ;;  %v1699_v13 = vsel %vm1625_vm10, %v6574_v51, %v1562_v39  ;;  %vm3954_vm10 = vcmp.eq.s32.totalorder %v5500_v18, 28 }
 0x227   :  { %v2938_v43 = vsel %vm2858_vm15, %v2917_v42, %v2801_v28  ;;  %v6575_v28 = vld [vmem:[#allocation72_spill] sm:$0xff] }
 0x228   :  { %v3075_v48 = vsel %vm2995_vm14, %v3054_v61, %v2938_v43  ;;  %v1836_v10 = vsel %vm1762_vm11, %v6575_v28, %v1699_v13  ;;  %vm4091_vm11 = vcmp.eq.s32.totalorder %v5500_v18, 29 }
 0x229   :  { %v1973_v4 = vsel %vm1899_vm12, %v6576_v22, %v1836_v10  ;;  %vm4228_vm12 = vcmp.eq.s32.totalorder %v5500_v18, 30 }
 0x22a   :  { %3871 = vperm.xlu1 %4580, %v5350_v27   ;;  %v2925_v47 = vpop.permute.xlu1 %2924  ;;  %v2110_v63 = vsel %vm2036_vm13, %v6577_v53, %v1973_v4  ;;  %vm4365_vm13 = vcmp.eq.s32.totalorder %v5500_v18, 31 }
 0x22b   :  { %v2942_v34 = vsel %vm2858_vm15, %v2925_v47, %v2805_v21  ;;  %v2247_v54 = vsel %vm6578_vm0, %v5503_v32, %v2110_v63  ;;  %v3175_v21 = vpop.permute.xlu0 %3174  ;;  %vm6584_vm0 = vmmov %vm6583_vm9 }
 0x22c   :  { %v3079_v58 = vsel %vm2995_vm14, %v3062_v6, %v2942_v34  ;;  %v2384_v50 = vsel %vm6579_vm2, %v5586_v46, %v2247_v54  ;;  %vm6586_vm2 = vmmov %vm6584_vm0 }
 0x22d   :  { %v2521_v33 = vsel %vm6580_vm3, %v5808_v20, %v2384_v50  ;;  %vm6587_vm3 = vmmov %vm6584_vm0 }
 0x22e   :  { %3879 = vperm.xlu1 %4580, %v5359_v35   ;;  %v2658_v32 = vsel %vm6581_vm4, %v5941_v24, %v2521_v33  ;;  %vm6588_vm4 = vmmov %vm6584_vm0 }
 0x22f   :  { %v3038_v23 = vpop.permute.xlu1 %3037  ;;  %v2795_v14 = vsel %vm6582_vm5, %v2768_v57, %v2658_v32  ;;  %v3187_v46 = vpop.permute.xlu0 %3186  ;;  %vm6589_vm5 = vmmov %vm6584_vm0 }
 0x230   :  { %v3067_v55 = vsel %vm2995_vm14, %v3038_v23, %v2930_v5  ;;  %v2932_v16 = vsel %vm2858_vm15, %v2905_v9, %v2795_v14  ;;  %vm3269_vm15 = vcmp.eq.s32.totalorder %v5500_v18, 23 }
 0x231   :  { %v3204_v7 = vsel %vm3132_vm1, %v3175_v21, %v3067_v55 }
 0x232   :  { %4581 = vset.pattern.permute.xlu1 %v4672_v25 }
 0x233   :  { %3992 = vperm.xlu1 %4581, %v5373_v3   ;;  %v3042_v20 = vpop.permute.xlu1 %3041  ;;  %v3195_v57 = vpop.permute.xlu0 %3194 }
 0x234   :  { %v3069_v5 = vsel %vm2995_vm14, %v3042_v20, %v2932_v16 }
 0x237   :  { %4000 = vperm.xlu1 %4581, %v5506_v15   ;;  %v3050_v24 = vpop.permute.xlu1 %3049  ;;  %v3308_v60 = vpop.permute.xlu0 %3307 }
 0x238   :  { %v3073_v61 = vsel %vm2995_vm14, %v3050_v24, %v6012_v59 }
 0x239   :  { %v3210_v25 = vsel %vm3132_vm1, %v3187_v46, %v3073_v61 }
 0x23b   :  { %4004 = vperm.xlu1 %4581, %v5383_v30   ;;  %v3058_v9 = vpop.permute.xlu1 %3057  ;;  %v3320_v36 = vpop.permute.xlu0 %3319 }
 0x23c   :  { %v3077_v26 = vsel %vm2995_vm14, %v3058_v9, %v6020_v38  ;;  %vm3406_vm14 = vcmp.eq.s32.totalorder %v5500_v18, 24 }
 0x23d   :  { %v3214_v0 = vsel %vm3132_vm1, %v3195_v57, %v3077_v26 }
 0x23f   :  { %4012 = vperm.xlu1 %4581, %v5391_v45   ;;  %v3328_v29 = vpop.permute.xlu0 %3327 }
 0x240   :  { %v3171_v59 = vpop.permute.xlu1 %3170 }
 0x241   :  { %v3202_v49 = vsel %vm3132_vm1, %v3171_v59, %v6028_v31 }
 0x242   :  { %v3339_v11 = vsel %vm3269_vm15, %v3308_v60, %v3202_v49 }
 0x243   :  { %4020 = vperm.xlu1 %4581, %v5401_v8  }
 0x244   :  { %v3179_v38 = vpop.permute.xlu1 %3178 }
 0x245   :  { %v3206_v2 = vsel %vm3132_vm1, %v3179_v38, %v3069_v5 }
 0x247   :  { %4584 = vset.pattern.permute.xlu1 %v4673_v44  ;;  %v3336_v44 = vpop.permute.xlu0 %3335 }
 0x248   :  { %4133 = vperm.xlu1 %4584, %v5339_v17   ;;  %v3183_v1 = vpop.permute.xlu1 %3182 }
 0x249   :  { %v3208_v42 = vsel %vm3132_vm1, %v3183_v1, %v3071_v40 }
 0x24a   :  { %v3345_v31 = vsel %vm3269_vm15, %v3320_v36, %v3208_v42 }
 0x24b   :  { %v3449_v6 = vpop.permute.xlu0 %3448 }
 0x24c   :  { %4137 = vperm.xlu1 %4584, %v5506_v15   ;;  %v3191_v56 = vpop.permute.xlu1 %3190 }
 0x24d   :  { %v3212_v37 = vsel %vm3132_vm1, %v3191_v56, %v3075_v48 }
 0x24e   :  { %v3349_v43 = vsel %vm3269_vm15, %v3328_v29, %v3212_v37 }
 0x24f   :  { %v3461_v51 = vpop.permute.xlu0 %3460 }
 0x250   :  { %4145 = vperm.xlu1 %4584, %v5350_v27   ;;  %v3199_v12 = vpop.permute.xlu1 %3198 }
 0x251   :  { %v3216_v19 = vsel %vm3132_vm1, %v3199_v12, %v3079_v58  ;;  %vm6585_vm1 = vmmov %vm6584_vm0 }
 0x252   :  { %v3353_v40 = vsel %vm3269_vm15, %v3336_v44, %v3216_v19 }
 0x253   :  { %v3469_v34 = vpop.permute.xlu0 %3468 }
 0x254   :  { %4153 = vperm.xlu1 %4584, %v5359_v35  }
 0x255   :  { %v3312_v41 = vpop.permute.xlu1 %3311 }
 0x256   :  { %v3341_v48 = vsel %vm3269_vm15, %v3312_v41, %v3204_v7 }
 0x257   :  { %v3478_v39 = vsel %vm3406_vm14, %v3449_v6, %v3341_v48  ;;  %v3582_v58 = vpop.permute.xlu0 %3581 }
 0x258   :  { %4585 = vset.pattern.permute.xlu1 %v4674_v52 }
 0x259   :  { %4266 = vperm.xlu1 %4585, %v5373_v3   ;;  %v3316_v13 = vpop.permute.xlu1 %3315 }
 0x25a   :  { %v3343_v47 = vsel %vm3269_vm15, %v3316_v13, %v3206_v2 }
 0x25d   :  { %4274 = vperm.xlu1 %4585, %v5506_v15   ;;  %v3324_v28 = vpop.permute.xlu1 %3323 }
 0x25e   :  { %v3347_v10 = vsel %vm3269_vm15, %v3324_v28, %v3210_v25 }
 0x25f   :  { %v3484_v22 = vsel %vm3406_vm14, %v3461_v51, %v3347_v10 }
 0x261   :  { %4278 = vperm.xlu1 %4585, %v5383_v30   ;;  %v3332_v52 = vpop.permute.xlu1 %3331  ;;  %v3594_v30 = vpop.permute.xlu0 %3593 }
 0x262   :  { %v3351_v3 = vsel %vm3269_vm15, %v3332_v52, %v3214_v0  ;;  %vm6590_vm15 = vmmov %vm6584_vm0 }
 0x263   :  { %v3488_v4 = vsel %vm3406_vm14, %v3469_v34, %v3351_v3 }
 0x265   :  { %4286 = vperm.xlu1 %4585, %v5391_v45   ;;  %v3602_v23 = vpop.permute.xlu0 %3601 }
 0x266   :  { %v3445_v53 = vpop.permute.xlu1 %3444 }
 0x267   :  { %v3476_v63 = vsel %vm3406_vm14, %v3445_v53, %v3339_v11 }
 0x268   :  { %v3613_v54 = vsel %vm3543_vm6, %v3582_v58, %v3476_v63 }
 0x269   :  { %4294 = vperm.xlu1 %4585, %v5401_v8  }
 0x26a   :  { %v3453_v21 = vpop.permute.xlu1 %3452 }
 0x26b   :  { %v3480_v50 = vsel %vm3406_vm14, %v3453_v21, %v3343_v47 }
 0x26d   :  { %4588 = vset.pattern.permute.xlu1 %v4675_v62  ;;  %v3610_v62 = vpop.permute.xlu0 %3609 }
 0x26e   :  { %4407 = vperm.xlu1 %4588, %v5339_v17   ;;  %v3457_v45 = vpop.permute.xlu1 %3456 }
 0x26f   :  { %v3482_v33 = vsel %vm3406_vm14, %v3457_v45, %v3345_v31 }
 0x270   :  { %v3619_v55 = vsel %vm3543_vm6, %v3594_v30, %v3482_v33 }
 0x272   :  { %4411 = vperm.xlu1 %4588, %v5506_v15   ;;  %v3465_v32 = vpop.permute.xlu1 %3464  ;;  %v3723_v15 = vpop.permute.xlu0 %3722 }
 0x273   :  { %v3486_v8 = vsel %vm3406_vm14, %v3465_v32, %v3349_v43 }
 0x274   :  { %v3623_v7 = vsel %vm3543_vm6, %v3602_v23, %v3486_v8 }
 0x276   :  { %4419 = vperm.xlu1 %4588, %v5350_v27   ;;  %v3473_v17 = vpop.permute.xlu1 %3472  ;;  %v3735_v27 = vpop.permute.xlu0 %3734 }
 0x277   :  { %v3490_v14 = vsel %vm3406_vm14, %v3473_v17, %v3353_v40 }
 0x278   :  { %v3627_v46 = vsel %vm3543_vm6, %v3610_v62, %v3490_v14 }
 0x27a   :  { %4427 = vperm.xlu1 %4588, %v5359_v35   ;;  %v3743_v35 = vpop.permute.xlu0 %3742 }
 0x27b   :  { %v3586_v16 = vpop.permute.xlu1 %3585 }
 0x27c   :  { %v3615_v20 = vsel %vm3543_vm6, %v3586_v16, %v3478_v39 }
 0x27d   :  { %v3752_v5 = vsel %vm3680_vm7, %v3723_v15, %v3615_v20 }
 0x27e   :  { %v3856_v59 = vpop.permute.xlu0 %3855 }
 0x27f   :  { %v3590_v24 = vpop.permute.xlu1 %3589 }
 0x280   :  { %v3617_v61 = vsel %vm3543_vm6, %v3590_v24, %v3480_v50 }
 0x282   :  { %v3868_v38 = vpop.permute.xlu0 %3867 }
 0x283   :  { %v3598_v57 = vpop.permute.xlu1 %3597 }
 0x284   :  { %v3621_v25 = vsel %vm3543_vm6, %v3598_v57, %v3484_v22 }
 0x285   :  { %v3758_v9 = vsel %vm3680_vm7, %v3735_v27, %v3621_v25 }
 0x286   :  { %v3876_v42 = vpop.permute.xlu0 %3875 }
 0x287   :  { %v3606_v26 = vpop.permute.xlu1 %3605 }
 0x288   :  { %v3625_v0 = vsel %vm3543_vm6, %v3606_v26, %v3488_v4 }
 0x289   :  { %v3762_v60 = vsel %vm3680_vm7, %v3743_v35, %v3625_v0 }
 0x28a   :  { %v3884_v12 = vpop.permute.xlu0 %3883 }
 0x28c   :  { %v3719_v49 = vpop.permute.xlu1 %3718 }
 0x28d   :  { %v3750_v11 = vsel %vm3680_vm7, %v3719_v49, %v3613_v54 }
 0x28e   :  { %v3887_v36 = vsel %vm3817_vm8, %v3856_v59, %v3750_v11  ;;  %v3997_v41 = vpop.permute.xlu0 %3996 }
 0x290   :  { %v3727_v2 = vpop.permute.xlu1 %3726 }
 0x291   :  { %v3754_v1 = vsel %vm3680_vm7, %v3727_v2, %v3617_v61 }
 0x292   :  { %v4009_v13 = vpop.permute.xlu0 %4008 }
 0x294   :  { %v3731_v29 = vpop.permute.xlu1 %3730 }
 0x295   :  { %v3756_v31 = vsel %vm3680_vm7, %v3731_v29, %v3619_v55 }
 0x296   :  { %v3893_v56 = vsel %vm3817_vm8, %v3868_v38, %v3756_v31  ;;  %v4017_v22 = vpop.permute.xlu0 %4016 }
 0x298   :  { %v3739_v37 = vpop.permute.xlu1 %3738 }
 0x299   :  { %v3760_v43 = vsel %vm3680_vm7, %v3739_v37, %v3623_v7 }
 0x29a   :  { %v3897_v44 = vsel %vm3817_vm8, %v3876_v42, %v3760_v43  ;;  %v4130_v53 = vpop.permute.xlu0 %4129 }
 0x29c   :  { %v3747_v19 = vpop.permute.xlu1 %3746 }
 0x29d   :  { %v3764_v40 = vsel %vm3680_vm7, %v3747_v19, %v3627_v46 }
 0x29e   :  { %v3901_v6 = vsel %vm3817_vm8, %v3884_v12, %v3764_v40  ;;  %v4142_v21 = vpop.permute.xlu0 %4141 }
 0x2a1   :  { %v3860_v48 = vpop.permute.xlu1 %3859 }
 0x2a2   :  { %v3889_v39 = vsel %vm3817_vm8, %v3860_v48, %v3752_v5  ;;  %v4150_v33 = vpop.permute.xlu0 %4149 }
 0x2a3   :  { %v4026_v51 = vsel %vm3954_vm10, %v3997_v41, %v3889_v39 }
 0x2a5   :  { %v3864_v47 = vpop.permute.xlu1 %3863 }
 0x2a6   :  { %v3891_v28 = vsel %vm3817_vm8, %v3864_v47, %v3754_v1  ;;  %v4158_v17 = vpop.permute.xlu0 %4157 }
 0x2a9   :  { %v3872_v10 = vpop.permute.xlu1 %3871 }
 0x2aa   :  { %v3895_v34 = vsel %vm3817_vm8, %v3872_v10, %v3758_v9  ;;  %v4271_v16 = vpop.permute.xlu0 %4270 }
 0x2ab   :  { %v4032_v52 = vsel %vm3954_vm10, %v4009_v13, %v3895_v34 }
 0x2ad   :  { %v3880_v3 = vpop.permute.xlu1 %3879 }
 0x2ae   :  { %v3899_v4 = vsel %vm3817_vm8, %v3880_v3, %v3762_v60  ;;  %v4283_v61 = vpop.permute.xlu0 %4282 }
 0x2af   :  { %v4036_v58 = vsel %vm3954_vm10, %v4017_v22, %v3899_v4 }
 0x2b2   :  { %v3993_v63 = vpop.permute.xlu1 %3992  ;;  %v4291_v26 = vpop.permute.xlu0 %4290 }
 0x2b3   :  { %v4024_v54 = vsel %vm3954_vm10, %v3993_v63, %v3887_v36 }
 0x2b4   :  { %v4161_v30 = vsel %vm4091_vm11, %v4130_v53, %v4024_v54 }
 0x2b6   :  { %v4001_v50 = vpop.permute.xlu1 %4000  ;;  %v4404_v49 = vpop.permute.xlu0 %4403 }
 0x2b7   :  { %v4028_v45 = vsel %vm3954_vm10, %v4001_v50, %v3891_v28 }
 0x2ba   :  { %v4005_v23 = vpop.permute.xlu1 %4004  ;;  %v4416_v2 = vpop.permute.xlu0 %4415 }
 0x2bb   :  { %v4030_v55 = vsel %vm3954_vm10, %v4005_v23, %v3893_v56 }
 0x2bc   :  { %v4167_v32 = vsel %vm4091_vm11, %v4142_v21, %v4030_v55 }
 0x2be   :  { %v4013_v8 = vpop.permute.xlu1 %4012  ;;  %v4424_v56 = vpop.permute.xlu0 %4423 }
 0x2bf   :  { %v4034_v7 = vsel %vm3954_vm10, %v4013_v8, %v3897_v44 }
 0x2c0   :  { %v4171_v62 = vsel %vm4091_vm11, %v4150_v33, %v4034_v7 }
 0x2c2   :  { %v4021_v14 = vpop.permute.xlu1 %4020  ;;  %v4432_v19 = vpop.permute.xlu0 %4431 }
 0x2c3   :  { %v4038_v46 = vsel %vm3954_vm10, %v4021_v14, %v3901_v6 }
 0x2c4   :  { %v4175_v15 = vsel %vm4091_vm11, %v4158_v17, %v4038_v46 }
 0x2c7   :  { %v4134_v20 = vpop.permute.xlu1 %4133 }
 0x2c8   :  { %v4163_v5 = vsel %vm4091_vm11, %v4134_v20, %v4026_v51 }
 0x2c9   :  { %v4300_v27 = vsel %vm4228_vm12, %v4271_v16, %v4163_v5 }
 0x2cb   :  { %v4138_v24 = vpop.permute.xlu1 %4137 }
 0x2cc   :  { %v4165_v57 = vsel %vm4091_vm11, %v4138_v24, %v4028_v45 }
 0x2cf   :  { %v4146_v25 = vpop.permute.xlu1 %4145 }
 0x2d0   :  { %v4169_v35 = vsel %vm4091_vm11, %v4146_v25, %v4032_v52 }
 0x2d1   :  { %v4306_v9 = vsel %vm4228_vm12, %v4283_v61, %v4169_v35 }
 0x2d3   :  { %v4154_v0 = vpop.permute.xlu1 %4153 }
 0x2d4   :  { %v4173_v60 = vsel %vm4091_vm11, %v4154_v0, %v4036_v58 }
 0x2d5   :  { %v4310_v59 = vsel %vm4228_vm12, %v4291_v26, %v4173_v60 }
 0x2d8   :  { %v4267_v11 = vpop.permute.xlu1 %4266 }
 0x2d9   :  { %v4298_v36 = vsel %vm4228_vm12, %v4267_v11, %v4161_v30 }
 0x2da   :  { %v4435_v38 = vsel %vm4365_vm13, %v4404_v49, %v4298_v36 }
 0x2db   :  { %4452 = vst.msk [vmem:[#allocation5 + $0x8] sm:$0xff] %vm6583_vm9, %v4435_v38 }
 0x2dc   :  { %v4275_v1 = vpop.permute.xlu1 %4274 }
 0x2dd   :  { %v4302_v29 = vsel %vm4228_vm12, %v4275_v1, %v4165_v57 }
 0x2e0   :  { %v4279_v42 = vpop.permute.xlu1 %4278 }
 0x2e1   :  { %v4304_v31 = vsel %vm4228_vm12, %v4279_v42, %v4167_v32 }
 0x2e2   :  { %v4441_v37 = vsel %vm4365_vm13, %v4416_v2, %v4304_v31 }
 0x2e3   :  { %4458 = vst.msk [vmem:[#allocation5 + $0x38] sm:$0xff] %vm6584_vm0, %v4441_v37 }
 0x2e4   :  { %v4287_v43 = vpop.permute.xlu1 %4286 }
 0x2e5   :  { %v4308_v44 = vsel %vm4228_vm12, %v4287_v43, %v4171_v62 }
 0x2e6   :  { %v4445_v12 = vsel %vm4365_vm13, %v4424_v56, %v4308_v44 }
 0x2e7   :  { %4462 = vst.msk [vmem:[#allocation5 + $0x58] sm:$0xff] %vm6585_vm1, %v4445_v12 }
 0x2e8   :  { %v4295_v40 = vpop.permute.xlu1 %4294 }
 0x2e9   :  { %v4312_v6 = vsel %vm4228_vm12, %v4295_v40, %v4175_v15 }
 0x2ea   :  { %v4449_v41 = vsel %vm4365_vm13, %v4432_v19, %v4312_v6 }
 0x2eb   :  { %4466 = vst.msk [vmem:[#allocation5 + $0x78] sm:$0xff] %vm6586_vm2, %v4449_v41 }
 0x2ed   :  { %v4408_v48 = vpop.permute.xlu1 %4407 }
 0x2ee   :  { %v4437_v39 = vsel %vm4365_vm13, %v4408_v48, %v4300_v27 }
 0x2ef   :  { %4454 = vst.msk [vmem:[#allocation5 + $0x18] sm:$0xff] %vm6587_vm3, %v4437_v39 }
 0x2f1   :  { %v4412_v51 = vpop.permute.xlu1 %4411 }
 0x2f2   :  { %v4439_v13 = vsel %vm4365_vm13, %v4412_v51, %v4302_v29 }
 0x2f3   :  { %4456 = vst.msk [vmem:[#allocation5 + $0x28] sm:$0xff] %vm6588_vm4, %v4439_v13 }
 0x2f5   :  { %v4420_v47 = vpop.permute.xlu1 %4419 }
 0x2f6   :  { %v4443_v28 = vsel %vm4365_vm13, %v4420_v47, %v4306_v9 }
 0x2f7   :  { %4460 = vst.msk [vmem:[#allocation5 + $0x48] sm:$0xff] %vm6589_vm5, %v4443_v28 }
 0x2f9   :  { %v4428_v10 = vpop.permute.xlu1 %4427 }
 0x2fa   :  { %v4447_v34 = vsel %vm4365_vm13, %v4428_v10, %v4310_v59 }
 0x2fb   :  { %4464 = vst.msk [vmem:[#allocation5 + $0x68] sm:$0xff] %vm6590_vm15, %v4447_v34 }
 0x2fc   :  { %4627 = shalt.err (!%p4624_p12)
}
 0x2fd   :  { %s4628_s22 = scalar_lea.hbm %s6333_s1, 2048 }
 0x2fe   :  { %p4629_p13 = scmp.ne.s32.totalorder %s6333_s1, %s4628_s22  ;;  %p4632_p0 = scmp.lt.u32.totalorder %s4628_s22, %s6333_s1 }
 0x300   :  { %p4634_p1 = pnand %p4632_p0, %p4629_p13 }
 0x302   :  { %4637 = shalt.err (!%p4634_p1)
}
 0x303   :  { %s4677_s27 = smov 128   ;;  %s4678_s28 = smov 8  }
 0x304   :  { %4478 = dma.vmem_to_hbm [thread:$0]  %s4473_s18, 2048, %s6333_s1, [#allocation4], %s4677_s27, %s4677_s27, %s4678_s28  }
 0x305   :  { %4640 = dma.done.wait [#allocation4], 2048  }
 0x306   :  { %4641 = vsyncadd [#allocation4], 4294965248 }
 0x307   :  { %4482 = vsyncpa [#allocation3], 1 }
 0x308   :  { %4483 = vsyncpa [#allocation4], 1 }

</bundles_post_ra>
